<compile_context>
chip_gen: v6e
topology: v6e:2x2x1
jax: 0.10.0
libtpu: 0.0.40
codegen_flags: <defaults>
</compile_context>

<pallas_src>
import functools

import jax
import jax.numpy as jnp
from jax.experimental import pallas as pl
from jax.experimental.pallas import tpu as pltpu


# ----------------------- small-shape test configuration ---------------------
# (original: 6144 -> 3072 -> 1536 -> 768, seq 512, 2*768 -> {512, 1 x 9})
B, S = 2, 8
D0, D1, D2 = 256, 128, 64
HID = 32
NUM_HEADS = 4
MLP_DIM = 64
NUM_LAYERS = 2
PE_OUT = 16            # stands in for the original 512-wide `last_linear_pe`
LN_EPS = 1e-6          # ViT LayerNorm eps (nn.LayerNorm default would be 1e-5)


# --------------------- generation-aware VMEM budget --------------------------

@functools.lru_cache(maxsize=None)
def _vmem_budget_bytes():
    """~3/4 of physical VMEM: ~48 MiB on v7x (64 MiB), ~96 MiB on v5e/v6e."""
    cap = 64 * 1024 * 1024
    try:
        info = pltpu.get_tpu_info()
        cap = int(getattr(info, "vmem_capacity_bytes", cap))
    except Exception:
        pass
    return max(32 * 1024 * 1024, (cap * 3) // 4)


# ------------------------------ tiled dense ----------------------------------

_TM_CANDS = (4096, 2048, 1024, 512, 256, 128, 64, 32, 16, 8)
_TN_CANDS = (1536, 1024, 768, 512, 384, 256, 128)
_TK_CANDS = (2048, 1536, 1024, 768, 512, 384, 256, 128)


def _axis_cands(dim, cands, align):
    out = [c for c in cands if c <= dim and dim % c == 0 and c % align == 0]
    out.append(dim)                      # the full dim is always a legal block
    return sorted(set(out), reverse=True)


def _select_dense_tiles(M, K, N, x_bytes, budget):
    """Largest tiling whose double-buffered tiles + f32 acc fit the VMEM budget,
    chosen to minimize HBM re-reads of the (big) weight and activation."""
    w_bytes, o_bytes, acc_bytes = 2, 2, 2
    best_key, best = None, None
    for tm in _axis_cands(M, _TM_CANDS, 8):
        for tn in _axis_cands(N, _TN_CANDS, 128):
            for tk in _axis_cands(K, _TK_CANDS, 128):
                vmem = (2 * tm * tk * x_bytes      # double-buffered activations
                        + 2 * tk * tn * w_bytes    # double-buffered weights
                        + 2 * tm * tn * o_bytes    # double-buffered output
                        + tm * tn * 4              # f32 accumulator scratch
                        + 2 * tn * 4)              # bias
                if vmem > budget:
                    continue
                traffic = (M * K * x_bytes * (N // tn)     # activation re-reads
                           + K * N * w_bytes * (M // tm)   # weight re-reads
                           + M * N * o_bytes)
                key = (-traffic, tk, tm * tn)
                if best_key is None or key > best_key:
                    best_key, best = key, (tm, tn, tk)
    if best is None:                     # fall back to the smallest legal tiles
        best = (_axis_cands(M, _TM_CANDS, 8)[-1],
                _axis_cands(N, _TN_CANDS, 128)[-1],
                _axis_cands(K, _TK_CANDS, 128)[-1])
    return best


def _dense_kernel(x_ref, w_ref, b_ref, o_ref, acc_ref):
    @pl.when(pl.program_id(2) == 0)
    def _():
        acc_ref[...] = jnp.zeros_like(acc_ref)

    # cast to bf16 in-kernel (no wrapper-side cast pass), f32 accumulation
    acc_ref[...] += jnp.dot(x_ref[...].astype(jnp.bfloat16), w_ref[...],
                            preferred_element_type=jnp.float32)

    @pl.when(pl.program_id(2) == pl.num_programs(2) - 1)
    def _():
        o_ref[...] = (acc_ref[...] + b_ref[...]).astype(o_ref.dtype)


@functools.lru_cache(maxsize=None)
def _build_dense(M, K, N, x_dtype_name, out_dtype_name):
    budget = _vmem_budget_bytes()
    x_bytes = jnp.dtype(x_dtype_name).itemsize
    TM, TN, TK = _select_dense_tiles(M, K, N, x_bytes, budget)
    grid = (M // TM, N // TN, K // TK)
    return pl.pallas_call(
        _dense_kernel,
        out_shape=jax.ShapeDtypeStruct((M, N), jnp.dtype(out_dtype_name)),
        grid_spec=pltpu.PrefetchScalarGridSpec(
            num_scalar_prefetch=0,
            grid=grid,
            in_specs=[
                pl.BlockSpec((TM, TK), lambda i, j, k: (i, k)),
                pl.BlockSpec((TK, TN), lambda i, j, k: (k, j)),
                pl.BlockSpec((1, TN), lambda i, j, k: (0, j)),
            ],
            out_specs=pl.BlockSpec((TM, TN), lambda i, j, k: (i, j)),
            scratch_shapes=[pltpu.VMEM((TM, TN), jnp.float32)],
        ),
        compiler_params=pltpu.CompilerParams(
            dimension_semantics=("parallel", "parallel", "arbitrary"),
            vmem_limit_bytes=budget),
    )


def dense(x2d, w_bf16, b, out_dtype=jnp.bfloat16):
    """y = x2d @ w + b  (bf16 MXU inputs cast in-kernel, f32 accumulation)."""
    M, K = x2d.shape
    K2, N = w_bf16.shape
    assert K == K2
    fn = _build_dense(M, K, N, x2d.dtype.name, jnp.dtype(out_dtype).name)
    return fn(x2d, w_bf16, b.reshape(1, N))


# ------------- fused ViT encoder: all layers in one pallas_call --------------

def _vit_layers_kernel(h_ref, pos_ref,
                       ln1g_ref, ln1b_ref, wqkv_ref, bqkv_ref,
                       wo_ref, bo_ref, ln2g_ref, ln2b_ref,
                       w1_ref, b1_ref, w2_ref, b2_ref,
                       o_ref, *, num_heads):
    @pl.when(pl.program_id(1) == 0)
    def _():
        # Layer 0: seed the residual stream.  o_ref stays VMEM-resident across
        # the whole layer axis (layer-invariant output block index).
        o_ref[0] = h_ref[0].astype(jnp.float32) + pos_ref[0]

    x = o_ref[0]                                   # (S, H) f32 residual stream
    seq, hid = x.shape
    dh = hid // num_heads
    scale = 1.0 / float(dh) ** 0.5

    def ln(v, g, b):
        mu = jnp.mean(v, axis=-1, keepdims=True)
        var = jnp.mean(jnp.square(v - mu), axis=-1, keepdims=True)
        return (v - mu) * jax.lax.rsqrt(var + LN_EPS) * g + b

    # ---- pre-norm 1 + fused QKV projection (one lane-dense matmul) ----
    xn = ln(x, ln1g_ref[0], ln1b_ref[0])
    qkv = jnp.dot(xn.astype(jnp.bfloat16), wqkv_ref[0],
                  preferred_element_type=jnp.float32) + bqkv_ref[0]   # (S, 3H)

    # ---- per-head attention with the output projection folded in ----
    # Accumulate into a full-width (S, H) f32 value: lane-dense, no masked
    # partial stores, no ctx scratch buffer.
    # TODO(synk): for 12-head / S=512 production shapes, switch this static
    #   unroll to a fori_loop (or heads grid axis) to bound live ranges.
    wo_full = wo_ref[0]                            # (H, H) bf16
    attn = jnp.zeros((seq, hid), jnp.float32)
    for hd in range(num_heads):
        lo = hd * dh
        q = (qkv[:, lo:lo + dh] * scale).astype(jnp.bfloat16)   # scale q, not scores
        k = qkv[:, hid + lo:hid + lo + dh].astype(jnp.bfloat16)
        v = qkv[:, 2 * hid + lo:2 * hid + lo + dh].astype(jnp.bfloat16)
        s = jax.lax.dot_general(                   # contract last dims: no k.T
            q, k, dimension_numbers=(((1,), (1,)), ((), ())),
            preferred_element_type=jnp.float32)    # (S, S)
        s = s - jnp.max(s, axis=-1, keepdims=True)
        p = jnp.exp(s)
        p = p / jnp.sum(p, axis=-1, keepdims=True)   # exact divide (parity)
        ctx = jnp.dot(p.astype(jnp.bfloat16), v,
                      preferred_element_type=jnp.float32)        # (S, dh)
        attn = attn + jnp.dot(ctx.astype(jnp.bfloat16), wo_full[lo:lo + dh, :],
                              preferred_element_type=jnp.float32)
    x = x + attn + bo_ref[0]

    # ---- pre-norm 2 + MLP + residual ----
    xn = ln(x, ln2g_ref[0], ln2b_ref[0])
    f = jnp.dot(xn.astype(jnp.bfloat16), w1_ref[0],
                preferred_element_type=jnp.float32) + b1_ref[0]
    f = jax.nn.gelu(f, approximate=True)   # TODO(synk): exact erf-GELU in ViT
    f = jnp.dot(f.astype(jnp.bfloat16), w2_ref[0],
                preferred_element_type=jnp.float32) + b2_ref[0]
    o_ref[0] = x + f


@functools.lru_cache(maxsize=None)
def _build_vit_layers(batch, seq, hid, mlp_dim, num_heads, num_layers):
    kern = functools.partial(_vit_layers_kernel, num_heads=num_heads)

    def per_layer(r, c):   # per-layer (stacked) parameter: pick layer l's slice
        return pl.BlockSpec((1, r, c), lambda b, l: (l, 0, 0))

    return pl.pallas_call(
        kern,
        out_shape=jax.ShapeDtypeStruct((batch, seq, hid), jnp.float32),
        grid_spec=pltpu.PrefetchScalarGridSpec(
            num_scalar_prefetch=0,
            grid=(batch, num_layers),
            in_specs=[
                pl.BlockSpec((1, seq, hid), lambda b, l: (b, 0, 0)),  # tokens (bf16)
                pl.BlockSpec((1, seq, hid), lambda b, l: (0, 0, 0)),  # pos-emb
                per_layer(1, hid), per_layer(1, hid),                 # ln1 g/b
                per_layer(hid, 3 * hid), per_layer(1, 3 * hid),       # wqkv / bqkv
                per_layer(hid, hid), per_layer(1, hid),               # wo / bo
                per_layer(1, hid), per_layer(1, hid),                 # ln2 g/b
                per_layer(hid, mlp_dim), per_layer(1, mlp_dim),       # w1 / b1
                per_layer(mlp_dim, hid), per_layer(1, hid),           # w2 / b2
            ],
            # layer-invariant output block => residual stream resident in VMEM
            out_specs=pl.BlockSpec((1, seq, hid), lambda b, l: (b, 0, 0)),
        ),
        compiler_params=pltpu.CompilerParams(
            dimension_semantics=("parallel", "arbitrary"),
            vmem_limit_bytes=_vmem_budget_bytes()),
    )


# ------- fused tail: final LN + max/attention pool + all 10 output heads -----

def _pool_head_kernel(h_ref, encg_ref, encb_ref, aw_ref, ab_ref, mask_ref,
                      wmax_ref, watt_ref, hb_ref, out_ref):
    x = h_ref[...]                                           # (B, S, H) f32
    mu = jnp.mean(x, axis=-1, keepdims=True)
    var = jnp.mean(jnp.square(x - mu), axis=-1, keepdims=True)
    xn = (x - mu) * jax.lax.rsqrt(var + LN_EPS)
    xn = xn * encg_ref[...][None] + encb_ref[...][None]      # final encoder LN

    # Attention(feature_dim=H, step_dim=S):  eij = tanh(x @ w + b)
    eij = jnp.sum(xn * aw_ref[...][None], axis=-1) + ab_ref[...]   # (B, S)
    eij = jnp.tanh(eij)
    a = jnp.exp(eij) * mask_ref[...]
    denom = jnp.sum(a, axis=1, keepdims=True)
    # Reference: a / sum(a) + 1e-10 (epsilon after the divide).  The max() only
    # guards the all-masked row from NaN.  TODO(synk): guard absent in reference.
    a = a / jnp.maximum(denom, 1e-10) + 1e-10
    # Attention pool as a batched (1,S)x(S,H) matmul -> MXU, not a VPU reduce.
    att = jnp.einsum("bqs,bsh->bqh",
                     a[:, None, :].astype(jnp.bfloat16),
                     xn.astype(jnp.bfloat16),
                     preferred_element_type=jnp.float32)[:, 0, :]   # (B, H)
    mx = jnp.max(xn, axis=1)          # (B, H); mask ignored (as in reference)

    # conc = [max_pool, att_pool]; heads weight is split row-wise so the concat
    # becomes two lane-dense matmuls (output padded to a 128-lane multiple).
    head = (jnp.dot(mx.astype(jnp.bfloat16), wmax_ref[...],
                    preferred_element_type=jnp.float32)
            + jnp.dot(att.astype(jnp.bfloat16), watt_ref[...],
                      preferred_element_type=jnp.float32)
            + hb_ref[...])
    out_ref[...] = head.astype(out_ref.dtype)


@functools.lru_cache(maxsize=None)
def _build_pool_head(batch, seq, hid, out_pad):
    return pl.pallas_call(
        _pool_head_kernel,
        out_shape=jax.ShapeDtypeStruct((batch, out_pad), jnp.float32),
        grid_spec=pltpu.PrefetchScalarGridSpec(
            num_scalar_prefetch=0,
            grid=(1,),
            in_specs=[
                pl.BlockSpec((batch, seq, hid), lambda i: (0, 0, 0)),
                pl.BlockSpec((1, hid), lambda i: (0, 0)),
                pl.BlockSpec((1, hid), lambda i: (0, 0)),
                pl.BlockSpec((1, hid), lambda i: (0, 0)),
                pl.BlockSpec((1, seq), lambda i: (0, 0)),
                pl.BlockSpec((batch, seq), lambda i: (0, 0)),
                pl.BlockSpec((hid, out_pad), lambda i: (0, 0)),
                pl.BlockSpec((hid, out_pad), lambda i: (0, 0)),
                pl.BlockSpec((1, out_pad), lambda i: (0, 0)),
            ],
            out_specs=pl.BlockSpec((batch, out_pad), lambda i: (0, 0)),
        ),
        compiler_params=pltpu.CompilerParams(
            vmem_limit_bytes=_vmem_budget_bytes()),
    )


# --------------------------- model (glue + params) ---------------------------

def init_params(key):
    keys = iter(jax.random.split(key, 128))

    def nrm(shape, scale):
        return jax.random.normal(next(keys), shape, jnp.float32) * scale

    def lin(din, dout, dtype=jnp.bfloat16):
        w = nrm((din, dout), 1.0 / float(din) ** 0.5).astype(dtype)
        return w, jnp.zeros((dout,), jnp.float32)

    p = {}
    # linear_feature1/2/3 (weights stored bf16 for the MXU, biases f32)
    p["lf1_w"], p["lf1_b"] = lin(D0, D1)
    p["lf2_w"], p["lf2_b"] = lin(D1, D2)
    p["lf3_w"], p["lf3_b"] = lin(D2, HID)

    # ViT encoder stand-in: per-layer params stacked along a leading L axis so
    # the whole encoder runs as one pallas_call with a layer grid axis.
    p["pos_emb"] = nrm((1, S, HID), 0.02)
    ln1_g, ln1_b, ln2_g, ln2_b = [], [], [], []
    wqkv, bqkv, wo, bo, w1, b1, w2, b2 = [], [], [], [], [], [], [], []
    for _ in range(NUM_LAYERS):
        ln1_g.append(jnp.ones((1, HID), jnp.float32))
        ln1_b.append(jnp.zeros((1, HID), jnp.float32))
        ln2_g.append(jnp.ones((1, HID), jnp.float32))
        ln2_b.append(jnp.zeros((1, HID), jnp.float32))
        wq, bq = lin(HID, HID)
        wk, bk = lin(HID, HID)
        wv, bv = lin(HID, HID)
        wqkv.append(jnp.concatenate([wq, wk, wv], axis=1))          # (H, 3H) bf16
        bqkv.append(jnp.concatenate([bq, bk, bv]).reshape(1, 3 * HID))
        w, bb = lin(HID, HID); wo.append(w); bo.append(bb.reshape(1, HID))
        w, bb = lin(HID, MLP_DIM); w1.append(w); b1.append(bb.reshape(1, MLP_DIM))
        w, bb = lin(MLP_DIM, HID); w2.append(w); b2.append(bb.reshape(1, HID))
    p["ln1_g"], p["ln1_b"] = jnp.stack(ln1_g), jnp.stack(ln1_b)
    p["ln2_g"], p["ln2_b"] = jnp.stack(ln2_g), jnp.stack(ln2_b)
    p["wqkv"], p["bqkv"] = jnp.stack(wqkv), jnp.stack(bqkv)
    p["wo"], p["bo"] = jnp.stack(wo), jnp.stack(bo)
    p["w1"], p["b1"] = jnp.stack(w1), jnp.stack(b1)
    p["w2"], p["b2"] = jnp.stack(w2), jnp.stack(b2)
    p["enc_ln_g"] = jnp.ones((1, HID), jnp.float32)
    p["enc_ln_b"] = jnp.zeros((1, HID), jnp.float32)

    # Attention(feature_dim=HID, step_dim=S): xavier_uniform weight, zero bias
    limit = (6.0 / (HID + 1)) ** 0.5
    p["att_w"] = jax.random.uniform(next(keys), (1, HID), jnp.float32, -limit, limit)
    p["att_b"] = jnp.zeros((1, S), jnp.float32)

    # 10 output heads fused into one matmul: pe -> PE_OUT, the other 9 -> 1 each.
    head_ws, head_bs = [], []
    w, bb = lin(2 * HID, PE_OUT, dtype=jnp.float32)
    head_ws.append(w); head_bs.append(bb)
    for _ in range(9):
        w, bb = lin(2 * HID, 1, dtype=jnp.float32)
        head_ws.append(w); head_bs.append(bb)
    heads_w = jnp.concatenate(head_ws, axis=1)       # (2*HID, PE_OUT + 9)
    heads_b = jnp.concatenate(head_bs, axis=0)
    n_out = heads_w.shape[1]
    out_pad = max(128, ((n_out + 127) // 128) * 128)  # lane-dense output width
    heads_w = jnp.pad(heads_w, ((0, 0), (0, out_pad - n_out)))
    heads_b = jnp.pad(heads_b, (0, out_pad - n_out))
    p["heads_w_max"] = heads_w[:HID].astype(jnp.bfloat16)   # rows hit by max_pool
    p["heads_w_att"] = heads_w[HID:].astype(jnp.bfloat16)   # rows hit by att_pool
    p["heads_b"] = heads_b.reshape(1, out_pad)
    return p


def forward(params, x, mask):
    b, s, d0 = x.shape

    # linear_feature1/2/3 (no nonlinearity between them, as in the reference);
    # bf16 activations between the dense layers, f32 accumulation inside.
    h = dense(x.reshape(b * s, d0), params["lf1_w"], params["lf1_b"])
    h = dense(h, params["lf2_w"], params["lf2_b"])
    h = dense(h, params["lf3_w"], params["lf3_b"])
    hid = params["lf3_w"].shape[1]
    h = h.reshape(b, s, hid)

    # self.lstm1 = VisionTransformer(...): fused pre-norm encoder, all layers
    # in one pallas_call (residual stream stays resident in VMEM).
    layers_fn = _build_vit_layers(b, s, hid, MLP_DIM, NUM_HEADS, NUM_LAYERS)
    h = layers_fn(h, params["pos_emb"],
                  params["ln1_g"], params["ln1_b"], params["wqkv"], params["bqkv"],
                  params["wo"], params["bo"], params["ln2_g"], params["ln2_b"],
                  params["w1"], params["b1"], params["w2"], params["b2"])

    # final encoder LN + max_pool + attention pool + all 10 heads, fused
    out_pad = params["heads_w_max"].shape[1]
    pool_fn = _build_pool_head(b, s, hid, out_pad)
    head_out = pool_fn(h, params["enc_ln_g"], params["enc_ln_b"],
                       params["att_w"], params["att_b"], mask,
                       params["heads_w_max"], params["heads_w_att"],
                       params["heads_b"])

    logits_pe = head_out[:, :PE_OUT]
    rest = [head_out[:, PE_OUT + i:PE_OUT + i + 1] for i in range(9)]
    (logits_npe, logits_idt, logits_lpe, logits_rpe, logits_cpe,
     logits_gte, logits_lt, logits_chronic, logits_acute_and_chronic) = rest
    return (logits_pe, logits_npe, logits_idt, logits_lpe, logits_rpe,
            logits_cpe, logits_gte, logits_lt, logits_chronic,
            logits_acute_and_chronic)


if __name__ == "__main__":
    key = jax.random.PRNGKey(0)
    kx, km, kp = jax.random.split(key, 3)

    x = jax.random.normal(kx, (B, S, D0), jnp.float32)
    mask = (jax.random.uniform(km, (B, S)) > 0.2).astype(jnp.float32)
    mask = mask.at[:, 0].set(1.0)   # keep at least one valid step per sample

    params = init_params(kp)
    fwd = jax.jit(forward)
    outs = jax.block_until_ready(fwd(params, x, mask))

    # mirrors check4NanVal
    for o in outs:
        assert not bool(jnp.any(jnp.isnan(o))), "NAN found in the model output"
    assert outs[0].shape == (B, PE_OUT)
    assert all(o.shape == (B, 1) for o in outs[1:])
    print("KERNEL_OK")
</pallas_src>

<mosaic_0001>
module attributes {stable_mosaic.version = 11 : i64} {
  func.func @_dense_kernel(%arg0: i32, %arg1: i32, %arg2: i32, %arg3: memref<16x256xf32, #tpu.memory_space<vmem>>, %arg4: memref<256x128xbf16, #tpu.memory_space<vmem>>, %arg5: memref<1x128xf32, #tpu.memory_space<vmem>>, %arg6: memref<16x128xbf16, #tpu.memory_space<vmem>>, %arg7: memref<16x128xf32, #tpu.memory_space<vmem>>) attributes {dimension_semantics = [#tpu.dimension_semantics<parallel>, #tpu.dimension_semantics<parallel>, #tpu.dimension_semantics<arbitrary>], iteration_bounds = array<i64: 1, 1, 1>, scalar_prefetch = 0 : i64, scratch_operands = 1 : i64, tpu.core_type = #tpu.core_type<tc>, window_params = [{transform_indices = @transform_0, window_bounds = array<i64: 16, 256>}, {transform_indices = @transform_1, window_bounds = array<i64: 256, 128>}, {transform_indices = @transform_2, window_bounds = array<i64: 1, 128>}, {transform_indices = @transform_3, window_bounds = array<i64: 16, 128>}]} {
    %c0_i32 = arith.constant 0 : i32
    %0 = arith.cmpi eq, %arg2, %c0_i32 : i32
    %1 = arith.extui %0 : i1 to i32
    %c0_i32_0 = arith.constant 0 : i32
    %2 = arith.cmpi ne, %1, %c0_i32_0 : i32
    scf.if %2 {
      %cst_10 = arith.constant 0.000000e+00 : f32
      %13 = vector.broadcast %cst_10 : f32 to vector<16x128xf32>
      %c0_11 = arith.constant 0 : index
      %c0_12 = arith.constant 0 : index
      %14 = vector.load %arg7[%c0_11, %c0_12] : memref<16x128xf32, #tpu.memory_space<vmem>>, vector<16x128xf32>
      tpu.vector_store %arg7[%c0_11, %c0_12], %13 {strides = array<i32>} : memref<16x128xf32, #tpu.memory_space<vmem>>, vector<16x128xf32>,
    } else {
    }
    %c0 = arith.constant 0 : index
    %c0_1 = arith.constant 0 : index
    %3 = vector.load %arg7[%c0, %c0_1] : memref<16x128xf32, #tpu.memory_space<vmem>>, vector<16x128xf32>
    %c0_2 = arith.constant 0 : index
    %c0_3 = arith.constant 0 : index
    %4 = vector.load %arg3[%c0_2, %c0_3] : memref<16x256xf32, #tpu.memory_space<vmem>>, vector<16x256xf32>
    %5 = arith.truncf %4 : vector<16x256xf32> to vector<16x256xbf16>
    %c0_4 = arith.constant 0 : index
    %c0_5 = arith.constant 0 : index
    %6 = vector.load %arg4[%c0_4, %c0_5] : memref<256x128xbf16, #tpu.memory_space<vmem>>, vector<256x128xbf16>
    %cst = arith.constant dense<0.000000e+00> : vector<16x128xf32>
    %7 = tpu.matmul %5, %6, %cst {dimension_numbers = #tpu.dot_dimension_numbers<[1], [0], [0], [1], [0, 0, 1, 1], [], []>} : vector<16x256xbf16>, vector<256x128xbf16>, vector<16x128xf32> -> vector<16x128xf32>
    %8 = arith.addf %3, %7 : vector<16x128xf32>
    %c0_6 = arith.constant 0 : index
    %c0_7 = arith.constant 0 : index
    %9 = vector.load %arg7[%c0_6, %c0_7] : memref<16x128xf32, #tpu.memory_space<vmem>>, vector<16x128xf32>
    tpu.vector_store %arg7[%c0_6, %c0_7], %8 {strides = array<i32>} : memref<16x128xf32, #tpu.memory_space<vmem>>, vector<16x128xf32>,
    %c0_i32_8 = arith.constant 0 : i32
    %10 = arith.cmpi eq, %arg2, %c0_i32_8 : i32
    %11 = arith.extui %10 : i1 to i32
    %c0_i32_9 = arith.constant 0 : i32
    %12 = arith.cmpi ne, %11, %c0_i32_9 : i32
    scf.if %12 {
      %c0_10 = arith.constant 0 : index
      %c0_11 = arith.constant 0 : index
      %13 = vector.load %arg7[%c0_10, %c0_11] : memref<16x128xf32, #tpu.memory_space<vmem>>, vector<16x128xf32>
      %c0_12 = arith.constant 0 : index
      %c0_13 = arith.constant 0 : index
      %14 = vector.load %arg5[%c0_12, %c0_13] : memref<1x128xf32, #tpu.memory_space<vmem>>, vector<1x128xf32>
      %15 = vector.broadcast %14 : vector<1x128xf32> to vector<16x128xf32>
      %16 = arith.addf %13, %15 : vector<16x128xf32>
      %17 = arith.truncf %16 : vector<16x128xf32> to vector<16x128xbf16>
      %c0_14 = arith.constant 0 : index
      %c0_15 = arith.constant 0 : index
      %18 = vector.load %arg6[%c0_14, %c0_15] : memref<16x128xbf16, #tpu.memory_space<vmem>>, vector<16x128xbf16>
      tpu.vector_store %arg6[%c0_14, %c0_15], %17 {strides = array<i32>} : memref<16x128xbf16, #tpu.memory_space<vmem>>, vector<16x128xbf16>,
    } else {
    }
    return
  }
  func.func @transform_0(%arg0: i32, %arg1: i32, %arg2: i32) -> (i32, i32) {
    %c0_i32 = arith.constant 0 : i32
    return %arg0, %arg2 : i32, i32
  }
  func.func @transform_1(%arg0: i32, %arg1: i32, %arg2: i32) -> (i32, i32) {
    %c0_i32 = arith.constant 0 : i32
    return %arg2, %arg1 : i32, i32
  }
  func.func @transform_2(%arg0: i32, %arg1: i32, %arg2: i32) -> (i32, i32) {
    %c0_i32 = arith.constant 0 : i32
    %c0_i32_0 = arith.constant 0 : i32
    return %c0_i32, %arg1 : i32, i32
  }
  func.func @transform_3(%arg0: i32, %arg1: i32, %arg2: i32) -> (i32, i32) {
    %c0_i32 = arith.constant 0 : i32
    return %arg0, %arg1 : i32, i32
  }
}

module attributes {stable_mosaic.version = 11 : i64} {
  func.func @_dense_kernel(%arg0: i32, %arg1: i32, %arg2: i32, %arg3: memref<16x128xbf16, #tpu.memory_space<vmem>>, %arg4: memref<128x64xbf16, #tpu.memory_space<vmem>>, %arg5: memref<1x64xf32, #tpu.memory_space<vmem>>, %arg6: memref<16x64xbf16, #tpu.memory_space<vmem>>, %arg7: memref<16x64xf32, #tpu.memory_space<vmem>>) attributes {dimension_semantics = [#tpu.dimension_semantics<parallel>, #tpu.dimension_semantics<parallel>, #tpu.dimension_semantics<arbitrary>], iteration_bounds = array<i64: 1, 1, 1>, scalar_prefetch = 0 : i64, scratch_operands = 1 : i64, tpu.core_type = #tpu.core_type<tc>, window_params = [{transform_indices = @transform_0, window_bounds = array<i64: 16, 128>}, {transform_indices = @transform_1, window_bounds = array<i64: 128, 64>}, {transform_indices = @transform_2, window_bounds = array<i64: 1, 64>}, {transform_indices = @transform_3, window_bounds = array<i64: 16, 64>}]} {
    %c0_i32 = arith.constant 0 : i32
    %0 = arith.cmpi eq, %arg2, %c0_i32 : i32
    %1 = arith.extui %0 : i1 to i32
    %c0_i32_0 = arith.constant 0 : i32
    %2 = arith.cmpi ne, %1, %c0_i32_0 : i32
    scf.if %2 {
      %cst_10 = arith.constant 0.000000e+00 : f32
      %12 = vector.broadcast %cst_10 : f32 to vector<16x64xf32>
      %c0_11 = arith.constant 0 : index
      %c0_12 = arith.constant 0 : index
      %13 = vector.load %arg7[%c0_11, %c0_12] : memref<16x64xf32, #tpu.memory_space<vmem>>, vector<16x64xf32>
      tpu.vector_store %arg7[%c0_11, %c0_12], %12 {strides = array<i32>} : memref<16x64xf32, #tpu.memory_space<vmem>>, vector<16x64xf32>,
    } else {
    }
    %c0 = arith.constant 0 : index
    %c0_1 = arith.constant 0 : index
    %3 = vector.load %arg7[%c0, %c0_1] : memref<16x64xf32, #tpu.memory_space<vmem>>, vector<16x64xf32>
    %c0_2 = arith.constant 0 : index
    %c0_3 = arith.constant 0 : index
    %4 = vector.load %arg3[%c0_2, %c0_3] : memref<16x128xbf16, #tpu.memory_space<vmem>>, vector<16x128xbf16>
    %c0_4 = arith.constant 0 : index
    %c0_5 = arith.constant 0 : index
    %5 = vector.load %arg4[%c0_4, %c0_5] : memref<128x64xbf16, #tpu.memory_space<vmem>>, vector<128x64xbf16>
    %cst = arith.constant dense<0.000000e+00> : vector<16x64xf32>
    %6 = tpu.matmul %4, %5, %cst {dimension_numbers = #tpu.dot_dimension_numbers<[1], [0], [0], [1], [0, 0, 1, 1], [], []>} : vector<16x128xbf16>, vector<128x64xbf16>, vector<16x64xf32> -> vector<16x64xf32>
    %7 = arith.addf %3, %6 : vector<16x64xf32>
    %c0_6 = arith.constant 0 : index
    %c0_7 = arith.constant 0 : index
    %8 = vector.load %arg7[%c0_6, %c0_7] : memref<16x64xf32, #tpu.memory_space<vmem>>, vector<16x64xf32>
    tpu.vector_store %arg7[%c0_6, %c0_7], %7 {strides = array<i32>} : memref<16x64xf32, #tpu.memory_space<vmem>>, vector<16x64xf32>,
    %c0_i32_8 = arith.constant 0 : i32
    %9 = arith.cmpi eq, %arg2, %c0_i32_8 : i32
    %10 = arith.extui %9 : i1 to i32
    %c0_i32_9 = arith.constant 0 : i32
    %11 = arith.cmpi ne, %10, %c0_i32_9 : i32
    scf.if %11 {
      %c0_10 = arith.constant 0 : index
      %c0_11 = arith.constant 0 : index
      %12 = vector.load %arg7[%c0_10, %c0_11] : memref<16x64xf32, #tpu.memory_space<vmem>>, vector<16x64xf32>
      %c0_12 = arith.constant 0 : index
      %c0_13 = arith.constant 0 : index
      %13 = vector.load %arg5[%c0_12, %c0_13] : memref<1x64xf32, #tpu.memory_space<vmem>>, vector<1x64xf32>
      %14 = vector.broadcast %13 : vector<1x64xf32> to vector<16x64xf32>
      %15 = arith.addf %12, %14 : vector<16x64xf32>
      %16 = arith.truncf %15 : vector<16x64xf32> to vector<16x64xbf16>
      %c0_14 = arith.constant 0 : index
      %c0_15 = arith.constant 0 : index
      %17 = vector.load %arg6[%c0_14, %c0_15] : memref<16x64xbf16, #tpu.memory_space<vmem>>, vector<16x64xbf16>
      tpu.vector_store %arg6[%c0_14, %c0_15], %16 {strides = array<i32>} : memref<16x64xbf16, #tpu.memory_space<vmem>>, vector<16x64xbf16>,
    } else {
    }
    return
  }
  func.func @transform_0(%arg0: i32, %arg1: i32, %arg2: i32) -> (i32, i32) {
    %c0_i32 = arith.constant 0 : i32
    return %arg0, %arg2 : i32, i32
  }
  func.func @transform_1(%arg0: i32, %arg1: i32, %arg2: i32) -> (i32, i32) {
    %c0_i32 = arith.constant 0 : i32
    return %arg2, %arg1 : i32, i32
  }
  func.func @transform_2(%arg0: i32, %arg1: i32, %arg2: i32) -> (i32, i32) {
    %c0_i32 = arith.constant 0 : i32
    %c0_i32_0 = arith.constant 0 : i32
    return %c0_i32, %arg1 : i32, i32
  }
  func.func @transform_3(%arg0: i32, %arg1: i32, %arg2: i32) -> (i32, i32) {
    %c0_i32 = arith.constant 0 : i32
    return %arg0, %arg1 : i32, i32
  }
}

module attributes {stable_mosaic.version = 11 : i64} {
  func.func @_vit_layers_kernel(%arg0: i32, %arg1: i32, %arg2: memref<1x8x32xbf16, #tpu.memory_space<vmem>>, %arg3: memref<1x8x32xf32, #tpu.memory_space<vmem>>, %arg4: memref<1x1x32xf32, #tpu.memory_space<vmem>>, %arg5: memref<1x1x32xf32, #tpu.memory_space<vmem>>, %arg6: memref<1x32x96xbf16, #tpu.memory_space<vmem>>, %arg7: memref<1x1x96xf32, #tpu.memory_space<vmem>>, %arg8: memref<1x32x32xbf16, #tpu.memory_space<vmem>>, %arg9: memref<1x1x32xf32, #tpu.memory_space<vmem>>, %arg10: memref<1x1x32xf32, #tpu.memory_space<vmem>>, %arg11: memref<1x1x32xf32, #tpu.memory_space<vmem>>, %arg12: memref<1x32x64xbf16, #tpu.memory_space<vmem>>, %arg13: memref<1x1x64xf32, #tpu.memory_space<vmem>>, %arg14: memref<1x64x32xbf16, #tpu.memory_space<vmem>>, %arg15: memref<1x1x32xf32, #tpu.memory_space<vmem>>, %arg16: memref<1x8x32xf32, #tpu.memory_space<vmem>>) attributes {dimension_semantics = [#tpu.dimension_semantics<parallel>, #tpu.dimension_semantics<arbitrary>], iteration_bounds = array<i64: 2, 2>, scalar_prefetch = 0 : i64, scratch_operands = 0 : i64, tpu.core_type = #tpu.core_type<tc>, window_params = [{transform_indices = @transform_0, window_bounds = array<i64: 1, 8, 32>}, {pipeline_mode = #tpu.pipeline_mode<synchronous>, transform_indices = @transform_1, window_bounds = array<i64: 1, 8, 32>}, {transform_indices = @transform_2, window_bounds = array<i64: 1, 1, 32>}, {transform_indices = @transform_3, window_bounds = array<i64: 1, 1, 32>}, {transform_indices = @transform_4, window_bounds = array<i64: 1, 32, 96>}, {transform_indices = @transform_5, window_bounds = array<i64: 1, 1, 96>}, {transform_indices = @transform_6, window_bounds = array<i64: 1, 32, 32>}, {transform_indices = @transform_7, window_bounds = array<i64: 1, 1, 32>}, {transform_indices = @transform_8, window_bounds = array<i64: 1, 1, 32>}, {transform_indices = @transform_9, window_bounds = array<i64: 1, 1, 32>}, {transform_indices = @transform_10, window_bounds = array<i64: 1, 32, 64>}, {transform_indices = @transform_11, window_bounds = array<i64: 1, 1, 64>}, {transform_indices = @transform_12, window_bounds = array<i64: 1, 64, 32>}, {transform_indices = @transform_13, window_bounds = array<i64: 1, 1, 32>}, {transform_indices = @transform_14, window_bounds = array<i64: 1, 8, 32>}]} {
    %c0_i32 = arith.constant 0 : i32
    %0 = arith.cmpi eq, %arg1, %c0_i32 : i32
    %1 = arith.extui %0 : i1 to i32
    %c0_i32_0 = arith.constant 0 : i32
    %2 = arith.cmpi ne, %1, %c0_i32_0 : i32
    scf.if %2 {
      %c0_83 = arith.constant 0 : index
      %c0_84 = arith.constant 0 : index
      %c0_85 = arith.constant 0 : index
      %202 = vector.load %arg2[%c0_83, %c0_84, %c0_85] : memref<1x8x32xbf16, #tpu.memory_space<vmem>>, vector<1x8x32xbf16>
      %203 = vector.shape_cast %202 : vector<1x8x32xbf16> to vector<8x32xbf16>
      %204 = arith.extf %203 : vector<8x32xbf16> to vector<8x32xf32>
      %c0_86 = arith.constant 0 : index
      %c0_87 = arith.constant 0 : index
      %c0_88 = arith.constant 0 : index
      %205 = vector.load %arg3[%c0_86, %c0_87, %c0_88] : memref<1x8x32xf32, #tpu.memory_space<vmem>>, vector<1x8x32xf32>
      %206 = vector.shape_cast %205 : vector<1x8x32xf32> to vector<8x32xf32>
      %207 = arith.addf %204, %206 : vector<8x32xf32>
      %c0_89 = arith.constant 0 : index
      %c0_90 = arith.constant 0 : index
      %c0_91 = arith.constant 0 : index
      %208 = vector.load %arg16[%c0_89, %c0_90, %c0_91] : memref<1x8x32xf32, #tpu.memory_space<vmem>>, vector<1x8x32xf32>
      %209 = vector.shape_cast %208 : vector<1x8x32xf32> to vector<8x32xf32>
      %210 = vector.shape_cast %207 : vector<8x32xf32> to vector<1x8x32xf32>
      tpu.vector_store %arg16[%c0_89, %c0_90, %c0_91], %210 {strides = array<i32>} : memref<1x8x32xf32, #tpu.memory_space<vmem>>, vector<1x8x32xf32>,
    } else {
    }
    %c0 = arith.constant 0 : index
    %c0_1 = arith.constant 0 : index
    %c0_2 = arith.constant 0 : index
    %3 = vector.load %arg16[%c0, %c0_1, %c0_2] : memref<1x8x32xf32, #tpu.memory_space<vmem>>, vector<1x8x32xf32>
    %4 = vector.shape_cast %3 : vector<1x8x32xf32> to vector<8x32xf32>
    %c0_3 = arith.constant 0 : index
    %c0_4 = arith.constant 0 : index
    %c0_5 = arith.constant 0 : index
    %5 = vector.load %arg4[%c0_3, %c0_4, %c0_5] : memref<1x1x32xf32, #tpu.memory_space<vmem>>, vector<1x1x32xf32>
    %6 = vector.shape_cast %5 : vector<1x1x32xf32> to vector<1x32xf32>
    %c0_6 = arith.constant 0 : index
    %c0_7 = arith.constant 0 : index
    %c0_8 = arith.constant 0 : index
    %7 = vector.load %arg5[%c0_6, %c0_7, %c0_8] : memref<1x1x32xf32, #tpu.memory_space<vmem>>, vector<1x1x32xf32>
    %8 = vector.shape_cast %7 : vector<1x1x32xf32> to vector<1x32xf32>
    %cst = arith.constant dense<0.000000e+00> : vector<8xf32>
    %9 = vector.multi_reduction <add>, %4, %cst [1] : vector<8x32xf32> to vector<8xf32>
    %10 = vector.shape_cast %9 : vector<8xf32> to vector<8x1xf32>
    %cst_9 = arith.constant 3.200000e+01 : f32
    %11 = vector.broadcast %cst_9 : f32 to vector<8x1xf32>
    %12 = arith.divf %10, %11 : vector<8x1xf32>
    %13 = vector.broadcast %12 : vector<8x1xf32> to vector<8x32xf32>
    %14 = arith.subf %4, %13 : vector<8x32xf32>
    %15 = arith.mulf %14, %14 : vector<8x32xf32>
    %cst_10 = arith.constant dense<0.000000e+00> : vector<8xf32>
    %16 = vector.multi_reduction <add>, %15, %cst_10 [1] : vector<8x32xf32> to vector<8xf32>
    %17 = vector.shape_cast %16 : vector<8xf32> to vector<8x1xf32>
    %cst_11 = arith.constant 3.200000e+01 : f32
    %18 = vector.broadcast %cst_11 : f32 to vector<8x1xf32>
    %19 = arith.divf %17, %18 : vector<8x1xf32>
    %20 = vector.broadcast %12 : vector<8x1xf32> to vector<8x32xf32>
    %21 = arith.subf %4, %20 : vector<8x32xf32>
    %cst_12 = arith.constant 9.99999997E-7 : f32
    %22 = vector.broadcast %cst_12 : f32 to vector<8x1xf32>
    %23 = arith.addf %19, %22 : vector<8x1xf32>
    %24 = math.rsqrt %23 : vector<8x1xf32>
    %25 = vector.broadcast %24 : vector<8x1xf32> to vector<8x32xf32>
    %26 = arith.mulf %21, %25 : vector<8x32xf32>
    %27 = vector.broadcast %6 : vector<1x32xf32> to vector<8x32xf32>
    %28 = arith.mulf %26, %27 : vector<8x32xf32>
    %29 = vector.broadcast %8 : vector<1x32xf32> to vector<8x32xf32>
    %30 = arith.addf %28, %29 : vector<8x32xf32>
    %31 = arith.truncf %30 : vector<8x32xf32> to vector<8x32xbf16>
    %c0_13 = arith.constant 0 : index
    %c0_14 = arith.constant 0 : index
    %c0_15 = arith.constant 0 : index
    %32 = vector.load %arg6[%c0_13, %c0_14, %c0_15] : memref<1x32x96xbf16, #tpu.memory_space<vmem>>, vector<1x32x96xbf16>
    %33 = vector.shape_cast %32 : vector<1x32x96xbf16> to vector<32x96xbf16>
    %cst_16 = arith.constant dense<0.000000e+00> : vector<8x96xf32>
    %34 = tpu.matmul %31, %33, %cst_16 {dimension_numbers = #tpu.dot_dimension_numbers<[1], [0], [0], [1], [0, 0, 1, 1], [], []>} : vector<8x32xbf16>, vector<32x96xbf16>, vector<8x96xf32> -> vector<8x96xf32>
    %c0_17 = arith.constant 0 : index
    %c0_18 = arith.constant 0 : index
    %c0_19 = arith.constant 0 : index
    %35 = vector.load %arg7[%c0_17, %c0_18, %c0_19] : memref<1x1x96xf32, #tpu.memory_space<vmem>>, vector<1x1x96xf32>
    %36 = vector.shape_cast %35 : vector<1x1x96xf32> to vector<1x96xf32>
    %37 = vector.broadcast %36 : vector<1x96xf32> to vector<8x96xf32>
    %38 = arith.addf %34, %37 : vector<8x96xf32>
    %c0_20 = arith.constant 0 : index
    %c0_21 = arith.constant 0 : index
    %c0_22 = arith.constant 0 : index
    %39 = vector.load %arg8[%c0_20, %c0_21, %c0_22] : memref<1x32x32xbf16, #tpu.memory_space<vmem>>, vector<1x32x32xbf16>
    %40 = vector.shape_cast %39 : vector<1x32x32xbf16> to vector<32x32xbf16>
    %cst_23 = arith.constant 0.000000e+00 : f32
    %41 = vector.broadcast %cst_23 : f32 to vector<8x32xf32>
    %42 = vector.extract_strided_slice %38 {offsets = [0, 0], sizes = [8, 8], strides = [1, 1]} : vector<8x96xf32> to vector<8x8xf32>
    %cst_24 = arith.constant 0.353553385 : f32
    %43 = vector.broadcast %cst_24 : f32 to vector<8x8xf32>
    %44 = arith.mulf %42, %43 : vector<8x8xf32>
    %45 = arith.truncf %44 : vector<8x8xf32> to vector<8x8xbf16>
    %46 = vector.extract_strided_slice %38 {offsets = [0, 32], sizes = [8, 8], strides = [1, 1]} : vector<8x96xf32> to vector<8x8xf32>
    %47 = arith.truncf %46 : vector<8x8xf32> to vector<8x8xbf16>
    %48 = vector.extract_strided_slice %38 {offsets = [0, 64], sizes = [8, 8], strides = [1, 1]} : vector<8x96xf32> to vector<8x8xf32>
    %49 = arith.truncf %48 : vector<8x8xf32> to vector<8x8xbf16>
    %cst_25 = arith.constant dense<0.000000e+00> : vector<8x8xf32>
    %50 = tpu.matmul %45, %47, %cst_25 {dimension_numbers = #tpu.dot_dimension_numbers<[1], [1], [0], [0], [0, 0, 1, 0], [], []>} : vector<8x8xbf16>, vector<8x8xbf16>, vector<8x8xf32> -> vector<8x8xf32>
    %cst_26 = arith.constant dense<0xFF800000> : vector<8xf32>
    %51 = vector.multi_reduction <maximumf>, %50, %cst_26 [1] : vector<8x8xf32> to vector<8xf32>
    %52 = vector.shape_cast %51 : vector<8xf32> to vector<8x1xf32>
    %53 = vector.broadcast %52 : vector<8x1xf32> to vector<8x8xf32>
    %54 = arith.subf %50, %53 : vector<8x8xf32>
    %55 = math.exp %54 : vector<8x8xf32>
    %cst_27 = arith.constant dense<0.000000e+00> : vector<8xf32>
    %56 = vector.multi_reduction <add>, %55, %cst_27 [1] : vector<8x8xf32> to vector<8xf32>
    %57 = vector.shape_cast %56 : vector<8xf32> to vector<8x1xf32>
    %58 = vector.broadcast %57 : vector<8x1xf32> to vector<8x8xf32>
    %59 = arith.divf %55, %58 : vector<8x8xf32>
    %60 = arith.truncf %59 : vector<8x8xf32> to vector<8x8xbf16>
    %cst_28 = arith.constant dense<0.000000e+00> : vector<8x8xf32>
    %61 = tpu.matmul %60, %49, %cst_28 {dimension_numbers = #tpu.dot_dimension_numbers<[1], [0], [0], [1], [0, 0, 1, 1], [], []>} : vector<8x8xbf16>, vector<8x8xbf16>, vector<8x8xf32> -> vector<8x8xf32>
    %62 = arith.truncf %61 : vector<8x8xf32> to vector<8x8xbf16>
    %63 = vector.extract_strided_slice %40 {offsets = [0, 0], sizes = [8, 32], strides = [1, 1]} : vector<32x32xbf16> to vector<8x32xbf16>
    %cst_29 = arith.constant dense<0.000000e+00> : vector<8x32xf32>
    %64 = tpu.matmul %62, %63, %cst_29 {dimension_numbers = #tpu.dot_dimension_numbers<[1], [0], [0], [1], [0, 0, 1, 1], [], []>} : vector<8x8xbf16>, vector<8x32xbf16>, vector<8x32xf32> -> vector<8x32xf32>
    %65 = arith.addf %41, %64 : vector<8x32xf32>
    %66 = vector.extract_strided_slice %38 {offsets = [0, 8], sizes = [8, 8], strides = [1, 1]} : vector<8x96xf32> to vector<8x8xf32>
    %cst_30 = arith.constant 0.353553385 : f32
    %67 = vector.broadcast %cst_30 : f32 to vector<8x8xf32>
    %68 = arith.mulf %66, %67 : vector<8x8xf32>
    %69 = arith.truncf %68 : vector<8x8xf32> to vector<8x8xbf16>
    %70 = vector.extract_strided_slice %38 {offsets = [0, 40], sizes = [8, 8], strides = [1, 1]} : vector<8x96xf32> to vector<8x8xf32>
    %71 = arith.truncf %70 : vector<8x8xf32> to vector<8x8xbf16>
    %72 = vector.extract_strided_slice %38 {offsets = [0, 72], sizes = [8, 8], strides = [1, 1]} : vector<8x96xf32> to vector<8x8xf32>
    %73 = arith.truncf %72 : vector<8x8xf32> to vector<8x8xbf16>
    %cst_31 = arith.constant dense<0.000000e+00> : vector<8x8xf32>
    %74 = tpu.matmul %69, %71, %cst_31 {dimension_numbers = #tpu.dot_dimension_numbers<[1], [1], [0], [0], [0, 0, 1, 0], [], []>} : vector<8x8xbf16>, vector<8x8xbf16>, vector<8x8xf32> -> vector<8x8xf32>
    %cst_32 = arith.constant dense<0xFF800000> : vector<8xf32>
    %75 = vector.multi_reduction <maximumf>, %74, %cst_32 [1] : vector<8x8xf32> to vector<8xf32>
    %76 = vector.shape_cast %75 : vector<8xf32> to vector<8x1xf32>
    %77 = vector.broadcast %76 : vector<8x1xf32> to vector<8x8xf32>
    %78 = arith.subf %74, %77 : vector<8x8xf32>
    %79 = math.exp %78 : vector<8x8xf32>
    %cst_33 = arith.constant dense<0.000000e+00> : vector<8xf32>
    %80 = vector.multi_reduction <add>, %79, %cst_33 [1] : vector<8x8xf32> to vector<8xf32>
    %81 = vector.shape_cast %80 : vector<8xf32> to vector<8x1xf32>
    %82 = vector.broadcast %81 : vector<8x1xf32> to vector<8x8xf32>
    %83 = arith.divf %79, %82 : vector<8x8xf32>
    %84 = arith.truncf %83 : vector<8x8xf32> to vector<8x8xbf16>
    %cst_34 = arith.constant dense<0.000000e+00> : vector<8x8xf32>
    %85 = tpu.matmul %84, %73, %cst_34 {dimension_numbers = #tpu.dot_dimension_numbers<[1], [0], [0], [1], [0, 0, 1, 1], [], []>} : vector<8x8xbf16>, vector<8x8xbf16>, vector<8x8xf32> -> vector<8x8xf32>
    %86 = arith.truncf %85 : vector<8x8xf32> to vector<8x8xbf16>
    %87 = vector.extract_strided_slice %40 {offsets = [8, 0], sizes = [8, 32], strides = [1, 1]} : vector<32x32xbf16> to vector<8x32xbf16>
    %cst_35 = arith.constant dense<0.000000e+00> : vector<8x32xf32>
    %88 = tpu.matmul %86, %87, %cst_35 {dimension_numbers = #tpu.dot_dimension_numbers<[1], [0], [0], [1], [0, 0, 1, 1], [], []>} : vector<8x8xbf16>, vector<8x32xbf16>, vector<8x32xf32> -> vector<8x32xf32>
    %89 = arith.addf %65, %88 : vector<8x32xf32>
    %90 = vector.extract_strided_slice %38 {offsets = [0, 16], sizes = [8, 8], strides = [1, 1]} : vector<8x96xf32> to vector<8x8xf32>
    %cst_36 = arith.constant 0.353553385 : f32
    %91 = vector.broadcast %cst_36 : f32 to vector<8x8xf32>
    %92 = arith.mulf %90, %91 : vector<8x8xf32>
    %93 = arith.truncf %92 : vector<8x8xf32> to vector<8x8xbf16>
    %94 = vector.extract_strided_slice %38 {offsets = [0, 48], sizes = [8, 8], strides = [1, 1]} : vector<8x96xf32> to vector<8x8xf32>
    %95 = arith.truncf %94 : vector<8x8xf32> to vector<8x8xbf16>
    %96 = vector.extract_strided_slice %38 {offsets = [0, 80], sizes = [8, 8], strides = [1, 1]} : vector<8x96xf32> to vector<8x8xf32>
    %97 = arith.truncf %96 : vector<8x8xf32> to vector<8x8xbf16>
    %cst_37 = arith.constant dense<0.000000e+00> : vector<8x8xf32>
    %98 = tpu.matmul %93, %95, %cst_37 {dimension_numbers = #tpu.dot_dimension_numbers<[1], [1], [0], [0], [0, 0, 1, 0], [], []>} : vector<8x8xbf16>, vector<8x8xbf16>, vector<8x8xf32> -> vector<8x8xf32>
    %cst_38 = arith.constant dense<0xFF800000> : vector<8xf32>
    %99 = vector.multi_reduction <maximumf>, %98, %cst_38 [1] : vector<8x8xf32> to vector<8xf32>
    %100 = vector.shape_cast %99 : vector<8xf32> to vector<8x1xf32>
    %101 = vector.broadcast %100 : vector<8x1xf32> to vector<8x8xf32>
    %102 = arith.subf %98, %101 : vector<8x8xf32>
    %103 = math.exp %102 : vector<8x8xf32>
    %cst_39 = arith.constant dense<0.000000e+00> : vector<8xf32>
    %104 = vector.multi_reduction <add>, %103, %cst_39 [1] : vector<8x8xf32> to vector<8xf32>
    %105 = vector.shape_cast %104 : vector<8xf32> to vector<8x1xf32>
    %106 = vector.broadcast %105 : vector<8x1xf32> to vector<8x8xf32>
    %107 = arith.divf %103, %106 : vector<8x8xf32>
    %108 = arith.truncf %107 : vector<8x8xf32> to vector<8x8xbf16>
    %cst_40 = arith.constant dense<0.000000e+00> : vector<8x8xf32>
    %109 = tpu.matmul %108, %97, %cst_40 {dimension_numbers = #tpu.dot_dimension_numbers<[1], [0], [0], [1], [0, 0, 1, 1], [], []>} : vector<8x8xbf16>, vector<8x8xbf16>, vector<8x8xf32> -> vector<8x8xf32>
    %110 = arith.truncf %109 : vector<8x8xf32> to vector<8x8xbf16>
    %111 = vector.extract_strided_slice %40 {offsets = [16, 0], sizes = [8, 32], strides = [1, 1]} : vector<32x32xbf16> to vector<8x32xbf16>
    %cst_41 = arith.constant dense<0.000000e+00> : vector<8x32xf32>
    %112 = tpu.matmul %110, %111, %cst_41 {dimension_numbers = #tpu.dot_dimension_numbers<[1], [0], [0], [1], [0, 0, 1, 1], [], []>} : vector<8x8xbf16>, vector<8x32xbf16>, vector<8x32xf32> -> vector<8x32xf32>
    %113 = arith.addf %89, %112 : vector<8x32xf32>
    %114 = vector.extract_strided_slice %38 {offsets = [0, 24], sizes = [8, 8], strides = [1, 1]} : vector<8x96xf32> to vector<8x8xf32>
    %cst_42 = arith.constant 0.353553385 : f32
    %115 = vector.broadcast %cst_42 : f32 to vector<8x8xf32>
    %116 = arith.mulf %114, %115 : vector<8x8xf32>
    %117 = arith.truncf %116 : vector<8x8xf32> to vector<8x8xbf16>
    %118 = vector.extract_strided_slice %38 {offsets = [0, 56], sizes = [8, 8], strides = [1, 1]} : vector<8x96xf32> to vector<8x8xf32>
    %119 = arith.truncf %118 : vector<8x8xf32> to vector<8x8xbf16>
    %120 = vector.extract_strided_slice %38 {offsets = [0, 88], sizes = [8, 8], strides = [1, 1]} : vector<8x96xf32> to vector<8x8xf32>
    %121 = arith.truncf %120 : vector<8x8xf32> to vector<8x8xbf16>
    %cst_43 = arith.constant dense<0.000000e+00> : vector<8x8xf32>
    %122 = tpu.matmul %117, %119, %cst_43 {dimension_numbers = #tpu.dot_dimension_numbers<[1], [1], [0], [0], [0, 0, 1, 0], [], []>} : vector<8x8xbf16>, vector<8x8xbf16>, vector<8x8xf32> -> vector<8x8xf32>
    %cst_44 = arith.constant dense<0xFF800000> : vector<8xf32>
    %123 = vector.multi_reduction <maximumf>, %122, %cst_44 [1] : vector<8x8xf32> to vector<8xf32>
    %124 = vector.shape_cast %123 : vector<8xf32> to vector<8x1xf32>
    %125 = vector.broadcast %124 : vector<8x1xf32> to vector<8x8xf32>
    %126 = arith.subf %122, %125 : vector<8x8xf32>
    %127 = math.exp %126 : vector<8x8xf32>
    %cst_45 = arith.constant dense<0.000000e+00> : vector<8xf32>
    %128 = vector.multi_reduction <add>, %127, %cst_45 [1] : vector<8x8xf32> to vector<8xf32>
    %129 = vector.shape_cast %128 : vector<8xf32> to vector<8x1xf32>
    %130 = vector.broadcast %129 : vector<8x1xf32> to vector<8x8xf32>
    %131 = arith.divf %127, %130 : vector<8x8xf32>
    %132 = arith.truncf %131 : vector<8x8xf32> to vector<8x8xbf16>
    %cst_46 = arith.constant dense<0.000000e+00> : vector<8x8xf32>
    %133 = tpu.matmul %132, %121, %cst_46 {dimension_numbers = #tpu.dot_dimension_numbers<[1], [0], [0], [1], [0, 0, 1, 1], [], []>} : vector<8x8xbf16>, vector<8x8xbf16>, vector<8x8xf32> -> vector<8x8xf32>
    %134 = arith.truncf %133 : vector<8x8xf32> to vector<8x8xbf16>
    %135 = vector.extract_strided_slice %40 {offsets = [24, 0], sizes = [8, 32], strides = [1, 1]} : vector<32x32xbf16> to vector<8x32xbf16>
    %cst_47 = arith.constant dense<0.000000e+00> : vector<8x32xf32>
    %136 = tpu.matmul %134, %135, %cst_47 {dimension_numbers = #tpu.dot_dimension_numbers<[1], [0], [0], [1], [0, 0, 1, 1], [], []>} : vector<8x8xbf16>, vector<8x32xbf16>, vector<8x32xf32> -> vector<8x32xf32>
    %137 = arith.addf %113, %136 : vector<8x32xf32>
    %138 = arith.addf %4, %137 : vector<8x32xf32>
    %c0_48 = arith.constant 0 : index
    %c0_49 = arith.constant 0 : index
    %c0_50 = arith.constant 0 : index
    %139 = vector.load %arg9[%c0_48, %c0_49, %c0_50] : memref<1x1x32xf32, #tpu.memory_space<vmem>>, vector<1x1x32xf32>
    %140 = vector.shape_cast %139 : vector<1x1x32xf32> to vector<1x32xf32>
    %141 = vector.broadcast %140 : vector<1x32xf32> to vector<8x32xf32>
    %142 = arith.addf %138, %141 : vector<8x32xf32>
    %c0_51 = arith.constant 0 : index
    %c0_52 = arith.constant 0 : index
    %c0_53 = arith.constant 0 : index
    %143 = vector.load %arg10[%c0_51, %c0_52, %c0_53] : memref<1x1x32xf32, #tpu.memory_space<vmem>>, vector<1x1x32xf32>
    %144 = vector.shape_cast %143 : vector<1x1x32xf32> to vector<1x32xf32>
    %c0_54 = arith.constant 0 : index
    %c0_55 = arith.constant 0 : index
    %c0_56 = arith.constant 0 : index
    %145 = vector.load %arg11[%c0_54, %c0_55, %c0_56] : memref<1x1x32xf32, #tpu.memory_space<vmem>>, vector<1x1x32xf32>
    %146 = vector.shape_cast %145 : vector<1x1x32xf32> to vector<1x32xf32>
    %cst_57 = arith.constant dense<0.000000e+00> : vector<8xf32>
    %147 = vector.multi_reduction <add>, %142, %cst_57 [1] : vector<8x32xf32> to vector<8xf32>
    %148 = vector.shape_cast %147 : vector<8xf32> to vector<8x1xf32>
    %cst_58 = arith.constant 3.200000e+01 : f32
    %149 = vector.broadcast %cst_58 : f32 to vector<8x1xf32>
    %150 = arith.divf %148, %149 : vector<8x1xf32>
    %151 = vector.broadcast %150 : vector<8x1xf32> to vector<8x32xf32>
    %152 = arith.subf %142, %151 : vector<8x32xf32>
    %153 = arith.mulf %152, %152 : vector<8x32xf32>
    %cst_59 = arith.constant dense<0.000000e+00> : vector<8xf32>
    %154 = vector.multi_reduction <add>, %153, %cst_59 [1] : vector<8x32xf32> to vector<8xf32>
    %155 = vector.shape_cast %154 : vector<8xf32> to vector<8x1xf32>
    %cst_60 = arith.constant 3.200000e+01 : f32
    %156 = vector.broadcast %cst_60 : f32 to vector<8x1xf32>
    %157 = arith.divf %155, %156 : vector<8x1xf32>
    %158 = vector.broadcast %150 : vector<8x1xf32> to vector<8x32xf32>
    %159 = arith.subf %142, %158 : vector<8x32xf32>
    %cst_61 = arith.constant 9.99999997E-7 : f32
    %160 = vector.broadcast %cst_61 : f32 to vector<8x1xf32>
    %161 = arith.addf %157, %160 : vector<8x1xf32>
    %162 = math.rsqrt %161 : vector<8x1xf32>
    %163 = vector.broadcast %162 : vector<8x1xf32> to vector<8x32xf32>
    %164 = arith.mulf %159, %163 : vector<8x32xf32>
    %165 = vector.broadcast %144 : vector<1x32xf32> to vector<8x32xf32>
    %166 = arith.mulf %164, %165 : vector<8x32xf32>
    %167 = vector.broadcast %146 : vector<1x32xf32> to vector<8x32xf32>
    %168 = arith.addf %166, %167 : vector<8x32xf32>
    %169 = arith.truncf %168 : vector<8x32xf32> to vector<8x32xbf16>
    %c0_62 = arith.constant 0 : index
    %c0_63 = arith.constant 0 : index
    %c0_64 = arith.constant 0 : index
    %170 = vector.load %arg12[%c0_62, %c0_63, %c0_64] : memref<1x32x64xbf16, #tpu.memory_space<vmem>>, vector<1x32x64xbf16>
    %171 = vector.shape_cast %170 : vector<1x32x64xbf16> to vector<32x64xbf16>
    %cst_65 = arith.constant dense<0.000000e+00> : vector<8x64xf32>
    %172 = tpu.matmul %169, %171, %cst_65 {dimension_numbers = #tpu.dot_dimension_numbers<[1], [0], [0], [1], [0, 0, 1, 1], [], []>} : vector<8x32xbf16>, vector<32x64xbf16>, vector<8x64xf32> -> vector<8x64xf32>
    %c0_66 = arith.constant 0 : index
    %c0_67 = arith.constant 0 : index
    %c0_68 = arith.constant 0 : index
    %173 = vector.load %arg13[%c0_66, %c0_67, %c0_68] : memref<1x1x64xf32, #tpu.memory_space<vmem>>, vector<1x1x64xf32>
    %174 = vector.shape_cast %173 : vector<1x1x64xf32> to vector<1x64xf32>
    %175 = vector.broadcast %174 : vector<1x64xf32> to vector<8x64xf32>
    %176 = arith.addf %172, %175 : vector<8x64xf32>
    %177 = arith.mulf %176, %176 : vector<8x64xf32>
    %178 = arith.mulf %176, %177 : vector<8x64xf32>
    %cst_69 = arith.constant 4.471500e-02 : f32
    %179 = vector.broadcast %cst_69 : f32 to vector<8x64xf32>
    %180 = arith.mulf %179, %178 : vector<8x64xf32>
    %181 = arith.addf %176, %180 : vector<8x64xf32>
    %cst_70 = arith.constant 0.797884583 : f32
    %182 = vector.broadcast %cst_70 : f32 to vector<8x64xf32>
    %183 = arith.mulf %182, %181 : vector<8x64xf32>
    %184 = math.tanh %183 : vector<8x64xf32>
    %cst_71 = arith.constant 1.000000e+00 : f32
    %185 = vector.broadcast %cst_71 : f32 to vector<8x64xf32>
    %186 = arith.addf %185, %184 : vector<8x64xf32>
    %cst_72 = arith.constant 5.000000e-01 : f32
    %187 = vector.broadcast %cst_72 : f32 to vector<8x64xf32>
    %188 = arith.mulf %187, %186 : vector<8x64xf32>
    %189 = arith.mulf %176, %188 : vector<8x64xf32>
    %190 = arith.truncf %189 : vector<8x64xf32> to vector<8x64xbf16>
    %c0_73 = arith.constant 0 : index
    %c0_74 = arith.constant 0 : index
    %c0_75 = arith.constant 0 : index
    %191 = vector.load %arg14[%c0_73, %c0_74, %c0_75] : memref<1x64x32xbf16, #tpu.memory_space<vmem>>, vector<1x64x32xbf16>
    %192 = vector.shape_cast %191 : vector<1x64x32xbf16> to vector<64x32xbf16>
    %cst_76 = arith.constant dense<0.000000e+00> : vector<8x32xf32>
    %193 = tpu.matmul %190, %192, %cst_76 {dimension_numbers = #tpu.dot_dimension_numbers<[1], [0], [0], [1], [0, 0, 1, 1], [], []>} : vector<8x64xbf16>, vector<64x32xbf16>, vector<8x32xf32> -> vector<8x32xf32>
    %c0_77 = arith.constant 0 : index
    %c0_78 = arith.constant 0 : index
    %c0_79 = arith.constant 0 : index
    %194 = vector.load %arg15[%c0_77, %c0_78, %c0_79] : memref<1x1x32xf32, #tpu.memory_space<vmem>>, vector<1x1x32xf32>
    %195 = vector.shape_cast %194 : vector<1x1x32xf32> to vector<1x32xf32>
    %196 = vector.broadcast %195 : vector<1x32xf32> to vector<8x32xf32>
    %197 = arith.addf %193, %196 : vector<8x32xf32>
    %198 = arith.addf %142, %197 : vector<8x32xf32>
    %c0_80 = arith.constant 0 : index
    %c0_81 = arith.constant 0 : index
    %c0_82 = arith.constant 0 : index
    %199 = vector.load %arg16[%c0_80, %c0_81, %c0_82] : memref<1x8x32xf32, #tpu.memory_space<vmem>>, vector<1x8x32xf32>
    %200 = vector.shape_cast %199 : vector<1x8x32xf32> to vector<8x32xf32>
    %201 = vector.shape_cast %198 : vector<8x32xf32> to vector<1x8x32xf32>
    tpu.vector_store %arg16[%c0_80, %c0_81, %c0_82], %201 {strides = array<i32>} : memref<1x8x32xf32, #tpu.memory_space<vmem>>, vector<1x8x32xf32>,
    return
  }
  func.func @transform_0(%arg0: i32, %arg1: i32) -> (i32, i32, i32) {
    %c0_i32 = arith.constant 0 : i32
    %c0_i32_0 = arith.constant 0 : i32
    %c0_i32_1 = arith.constant 0 : i32
    return %arg0, %c0_i32, %c0_i32_0 : i32, i32, i32
  }
  func.func @transform_1(%arg0: i32, %arg1: i32) -> (i32, i32, i32) {
    %c0_i32 = arith.constant 0 : i32
    %c0_i32_0 = arith.constant 0 : i32
    %c0_i32_1 = arith.constant 0 : i32
    %c0_i32_2 = arith.constant 0 : i32
    return %c0_i32, %c0_i32_0, %c0_i32_1 : i32, i32, i32
  }
  func.func @transform_2(%arg0: i32, %arg1: i32) -> (i32, i32, i32) {
    %c0_i32 = arith.constant 0 : i32
    %c0_i32_0 = arith.constant 0 : i32
    %c0_i32_1 = arith.constant 0 : i32
    return %arg1, %c0_i32, %c0_i32_0 : i32, i32, i32
  }
  func.func @transform_3(%arg0: i32, %arg1: i32) -> (i32, i32, i32) {
    %c0_i32 = arith.constant 0 : i32
    %c0_i32_0 = arith.constant 0 : i32
    %c0_i32_1 = arith.constant 0 : i32
    return %arg1, %c0_i32, %c0_i32_0 : i32, i32, i32
  }
  func.func @transform_4(%arg0: i32, %arg1: i32) -> (i32, i32, i32) {
    %c0_i32 = arith.constant 0 : i32
    %c0_i32_0 = arith.constant 0 : i32
    %c0_i32_1 = arith.constant 0 : i32
    return %arg1, %c0_i32, %c0_i32_0 : i32, i32, i32
  }
  func.func @transform_5(%arg0: i32, %arg1: i32) -> (i32, i32, i32) {
    %c0_i32 = arith.constant 0 : i32
    %c0_i32_0 = arith.constant 0 : i32
    %c0_i32_1 = arith.constant 0 : i32
    return %arg1, %c0_i32, %c0_i32_0 : i32, i32, i32
  }
  func.func @transform_6(%arg0: i32, %arg1: i32) -> (i32, i32, i32) {
    %c0_i32 = arith.constant 0 : i32
    %c0_i32_0 = arith.constant 0 : i32
    %c0_i32_1 = arith.constant 0 : i32
    return %arg1, %c0_i32, %c0_i32_0 : i32, i32, i32
  }
  func.func @transform_7(%arg0: i32, %arg1: i32) -> (i32, i32, i32) {
    %c0_i32 = arith.constant 0 : i32
    %c0_i32_0 = arith.constant 0 : i32
    %c0_i32_1 = arith.constant 0 : i32
    return %arg1, %c0_i32, %c0_i32_0 : i32, i32, i32
  }
  func.func @transform_8(%arg0: i32, %arg1: i32) -> (i32, i32, i32) {
    %c0_i32 = arith.constant 0 : i32
    %c0_i32_0 = arith.constant 0 : i32
    %c0_i32_1 = arith.constant 0 : i32
    return %arg1, %c0_i32, %c0_i32_0 : i32, i32, i32
  }
  func.func @transform_9(%arg0: i32, %arg1: i32) -> (i32, i32, i32) {
    %c0_i32 = arith.constant 0 : i32
    %c0_i32_0 = arith.constant 0 : i32
    %c0_i32_1 = arith.constant 0 : i32
    return %arg1, %c0_i32, %c0_i32_0 : i32, i32, i32
  }
  func.func @transform_10(%arg0: i32, %arg1: i32) -> (i32, i32, i32) {
    %c0_i32 = arith.constant 0 : i32
    %c0_i32_0 = arith.constant 0 : i32
    %c0_i32_1 = arith.constant 0 : i32
    return %arg1, %c0_i32, %c0_i32_0 : i32, i32, i32
  }
  func.func @transform_11(%arg0: i32, %arg1: i32) -> (i32, i32, i32) {
    %c0_i32 = arith.constant 0 : i32
    %c0_i32_0 = arith.constant 0 : i32
    %c0_i32_1 = arith.constant 0 : i32
    return %arg1, %c0_i32, %c0_i32_0 : i32, i32, i32
  }
  func.func @transform_12(%arg0: i32, %arg1: i32) -> (i32, i32, i32) {
    %c0_i32 = arith.constant 0 : i32
    %c0_i32_0 = arith.constant 0 : i32
    %c0_i32_1 = arith.constant 0 : i32
    return %arg1, %c0_i32, %c0_i32_0 : i32, i32, i32
  }
  func.func @transform_13(%arg0: i32, %arg1: i32) -> (i32, i32, i32) {
    %c0_i32 = arith.constant 0 : i32
    %c0_i32_0 = arith.constant 0 : i32
    %c0_i32_1 = arith.constant 0 : i32
    return %arg1, %c0_i32, %c0_i32_0 : i32, i32, i32
  }
  func.func @transform_14(%arg0: i32, %arg1: i32) -> (i32, i32, i32) {
    %c0_i32 = arith.constant 0 : i32
    %c0_i32_0 = arith.constant 0 : i32
    %c0_i32_1 = arith.constant 0 : i32
    return %arg0, %c0_i32, %c0_i32_0 : i32, i32, i32
  }
}

module attributes {stable_mosaic.version = 11 : i64} {
  func.func @_dense_kernel(%arg0: i32, %arg1: i32, %arg2: i32, %arg3: memref<16x64xbf16, #tpu.memory_space<vmem>>, %arg4: memref<64x32xbf16, #tpu.memory_space<vmem>>, %arg5: memref<1x32xf32, #tpu.memory_space<vmem>>, %arg6: memref<16x32xbf16, #tpu.memory_space<vmem>>, %arg7: memref<16x32xf32, #tpu.memory_space<vmem>>) attributes {dimension_semantics = [#tpu.dimension_semantics<parallel>, #tpu.dimension_semantics<parallel>, #tpu.dimension_semantics<arbitrary>], iteration_bounds = array<i64: 1, 1, 1>, scalar_prefetch = 0 : i64, scratch_operands = 1 : i64, tpu.core_type = #tpu.core_type<tc>, window_params = [{transform_indices = @transform_0, window_bounds = array<i64: 16, 64>}, {transform_indices = @transform_1, window_bounds = array<i64: 64, 32>}, {transform_indices = @transform_2, window_bounds = array<i64: 1, 32>}, {transform_indices = @transform_3, window_bounds = array<i64: 16, 32>}]} {
    %c0_i32 = arith.constant 0 : i32
    %0 = arith.cmpi eq, %arg2, %c0_i32 : i32
    %1 = arith.extui %0 : i1 to i32
    %c0_i32_0 = arith.constant 0 : i32
    %2 = arith.cmpi ne, %1, %c0_i32_0 : i32
    scf.if %2 {
      %cst_10 = arith.constant 0.000000e+00 : f32
      %12 = vector.broadcast %cst_10 : f32 to vector<16x32xf32>
      %c0_11 = arith.constant 0 : index
      %c0_12 = arith.constant 0 : index
      %13 = vector.load %arg7[%c0_11, %c0_12] : memref<16x32xf32, #tpu.memory_space<vmem>>, vector<16x32xf32>
      tpu.vector_store %arg7[%c0_11, %c0_12], %12 {strides = array<i32>} : memref<16x32xf32, #tpu.memory_space<vmem>>, vector<16x32xf32>,
    } else {
    }
    %c0 = arith.constant 0 : index
    %c0_1 = arith.constant 0 : index
    %3 = vector.load %arg7[%c0, %c0_1] : memref<16x32xf32, #tpu.memory_space<vmem>>, vector<16x32xf32>
    %c0_2 = arith.constant 0 : index
    %c0_3 = arith.constant 0 : index
    %4 = vector.load %arg3[%c0_2, %c0_3] : memref<16x64xbf16, #tpu.memory_space<vmem>>, vector<16x64xbf16>
    %c0_4 = arith.constant 0 : index
    %c0_5 = arith.constant 0 : index
    %5 = vector.load %arg4[%c0_4, %c0_5] : memref<64x32xbf16, #tpu.memory_space<vmem>>, vector<64x32xbf16>
    %cst = arith.constant dense<0.000000e+00> : vector<16x32xf32>
    %6 = tpu.matmul %4, %5, %cst {dimension_numbers = #tpu.dot_dimension_numbers<[1], [0], [0], [1], [0, 0, 1, 1], [], []>} : vector<16x64xbf16>, vector<64x32xbf16>, vector<16x32xf32> -> vector<16x32xf32>
    %7 = arith.addf %3, %6 : vector<16x32xf32>
    %c0_6 = arith.constant 0 : index
    %c0_7 = arith.constant 0 : index
    %8 = vector.load %arg7[%c0_6, %c0_7] : memref<16x32xf32, #tpu.memory_space<vmem>>, vector<16x32xf32>
    tpu.vector_store %arg7[%c0_6, %c0_7], %7 {strides = array<i32>} : memref<16x32xf32, #tpu.memory_space<vmem>>, vector<16x32xf32>,
    %c0_i32_8 = arith.constant 0 : i32
    %9 = arith.cmpi eq, %arg2, %c0_i32_8 : i32
    %10 = arith.extui %9 : i1 to i32
    %c0_i32_9 = arith.constant 0 : i32
    %11 = arith.cmpi ne, %10, %c0_i32_9 : i32
    scf.if %11 {
      %c0_10 = arith.constant 0 : index
      %c0_11 = arith.constant 0 : index
      %12 = vector.load %arg7[%c0_10, %c0_11] : memref<16x32xf32, #tpu.memory_space<vmem>>, vector<16x32xf32>
      %c0_12 = arith.constant 0 : index
      %c0_13 = arith.constant 0 : index
      %13 = vector.load %arg5[%c0_12, %c0_13] : memref<1x32xf32, #tpu.memory_space<vmem>>, vector<1x32xf32>
      %14 = vector.broadcast %13 : vector<1x32xf32> to vector<16x32xf32>
      %15 = arith.addf %12, %14 : vector<16x32xf32>
      %16 = arith.truncf %15 : vector<16x32xf32> to vector<16x32xbf16>
      %c0_14 = arith.constant 0 : index
      %c0_15 = arith.constant 0 : index
      %17 = vector.load %arg6[%c0_14, %c0_15] : memref<16x32xbf16, #tpu.memory_space<vmem>>, vector<16x32xbf16>
      tpu.vector_store %arg6[%c0_14, %c0_15], %16 {strides = array<i32>} : memref<16x32xbf16, #tpu.memory_space<vmem>>, vector<16x32xbf16>,
    } else {
    }
    return
  }
  func.func @transform_0(%arg0: i32, %arg1: i32, %arg2: i32) -> (i32, i32) {
    %c0_i32 = arith.constant 0 : i32
    return %arg0, %arg2 : i32, i32
  }
  func.func @transform_1(%arg0: i32, %arg1: i32, %arg2: i32) -> (i32, i32) {
    %c0_i32 = arith.constant 0 : i32
    return %arg2, %arg1 : i32, i32
  }
  func.func @transform_2(%arg0: i32, %arg1: i32, %arg2: i32) -> (i32, i32) {
    %c0_i32 = arith.constant 0 : i32
    %c0_i32_0 = arith.constant 0 : i32
    return %c0_i32, %arg1 : i32, i32
  }
  func.func @transform_3(%arg0: i32, %arg1: i32, %arg2: i32) -> (i32, i32) {
    %c0_i32 = arith.constant 0 : i32
    return %arg0, %arg1 : i32, i32
  }
}

module attributes {stable_mosaic.version = 11 : i64} {
  func.func @_pool_head_kernel(%arg0: i32, %arg1: memref<2x8x32xf32, #tpu.memory_space<vmem>>, %arg2: memref<1x32xf32, #tpu.memory_space<vmem>>, %arg3: memref<1x32xf32, #tpu.memory_space<vmem>>, %arg4: memref<1x32xf32, #tpu.memory_space<vmem>>, %arg5: memref<1x8xf32, #tpu.memory_space<vmem>>, %arg6: memref<2x8xf32, #tpu.memory_space<vmem>>, %arg7: memref<32x128xbf16, #tpu.memory_space<vmem>>, %arg8: memref<32x128xbf16, #tpu.memory_space<vmem>>, %arg9: memref<1x128xf32, #tpu.memory_space<vmem>>, %arg10: memref<2x128xf32, #tpu.memory_space<vmem>>) attributes {dimension_semantics = [#tpu.dimension_semantics<arbitrary>], iteration_bounds = array<i64: 1>, scalar_prefetch = 0 : i64, scratch_operands = 0 : i64, tpu.core_type = #tpu.core_type<tc>, window_params = [{pipeline_mode = #tpu.pipeline_mode<synchronous>, transform_indices = @transform_0, window_bounds = array<i64: 2, 8, 32>}, {pipeline_mode = #tpu.pipeline_mode<synchronous>, transform_indices = @transform_1, window_bounds = array<i64: 1, 32>}, {pipeline_mode = #tpu.pipeline_mode<synchronous>, transform_indices = @transform_2, window_bounds = array<i64: 1, 32>}, {pipeline_mode = #tpu.pipeline_mode<synchronous>, transform_indices = @transform_3, window_bounds = array<i64: 1, 32>}, {pipeline_mode = #tpu.pipeline_mode<synchronous>, transform_indices = @transform_4, window_bounds = array<i64: 1, 8>}, {pipeline_mode = #tpu.pipeline_mode<synchronous>, transform_indices = @transform_5, window_bounds = array<i64: 2, 8>}, {pipeline_mode = #tpu.pipeline_mode<synchronous>, transform_indices = @transform_6, window_bounds = array<i64: 32, 128>}, {pipeline_mode = #tpu.pipeline_mode<synchronous>, transform_indices = @transform_7, window_bounds = array<i64: 32, 128>}, {pipeline_mode = #tpu.pipeline_mode<synchronous>, transform_indices = @transform_8, window_bounds = array<i64: 1, 128>}, {pipeline_mode = #tpu.pipeline_mode<synchronous>, transform_indices = @transform_9, window_bounds = array<i64: 2, 128>}]} {
    %c0 = arith.constant 0 : index
    %c0_0 = arith.constant 0 : index
    %c0_1 = arith.constant 0 : index
    %0 = vector.load %arg1[%c0, %c0_0, %c0_1] : memref<2x8x32xf32, #tpu.memory_space<vmem>>, vector<2x8x32xf32>
    %cst = arith.constant dense<0.000000e+00> : vector<2x8xf32>
    %1 = vector.multi_reduction <add>, %0, %cst [2] : vector<2x8x32xf32> to vector<2x8xf32>
    %2 = vector.shape_cast %1 : vector<2x8xf32> to vector<2x8x1xf32>
    %cst_2 = arith.constant 3.200000e+01 : f32
    %3 = vector.broadcast %cst_2 : f32 to vector<2x8x1xf32>
    %4 = arith.divf %2, %3 : vector<2x8x1xf32>
    %5 = vector.broadcast %4 : vector<2x8x1xf32> to vector<2x8x32xf32>
    %6 = arith.subf %0, %5 : vector<2x8x32xf32>
    %7 = arith.mulf %6, %6 : vector<2x8x32xf32>
    %cst_3 = arith.constant dense<0.000000e+00> : vector<2x8xf32>
    %8 = vector.multi_reduction <add>, %7, %cst_3 [2] : vector<2x8x32xf32> to vector<2x8xf32>
    %9 = vector.shape_cast %8 : vector<2x8xf32> to vector<2x8x1xf32>
    %cst_4 = arith.constant 3.200000e+01 : f32
    %10 = vector.broadcast %cst_4 : f32 to vector<2x8x1xf32>
    %11 = arith.divf %9, %10 : vector<2x8x1xf32>
    %12 = vector.broadcast %4 : vector<2x8x1xf32> to vector<2x8x32xf32>
    %13 = arith.subf %0, %12 : vector<2x8x32xf32>
    %cst_5 = arith.constant 9.99999997E-7 : f32
    %14 = vector.broadcast %cst_5 : f32 to vector<2x8x1xf32>
    %15 = arith.addf %11, %14 : vector<2x8x1xf32>
    %16 = math.rsqrt %15 : vector<2x8x1xf32>
    %17 = vector.broadcast %16 : vector<2x8x1xf32> to vector<2x8x32xf32>
    %18 = arith.mulf %13, %17 : vector<2x8x32xf32>
    %c0_6 = arith.constant 0 : index
    %c0_7 = arith.constant 0 : index
    %19 = vector.load %arg2[%c0_6, %c0_7] : memref<1x32xf32, #tpu.memory_space<vmem>>, vector<1x32xf32>
    %20 = vector.shape_cast %19 : vector<1x32xf32> to vector<1x1x32xf32>
    %21 = vector.broadcast %20 : vector<1x1x32xf32> to vector<2x8x32xf32>
    %22 = arith.mulf %18, %21 : vector<2x8x32xf32>
    %c0_8 = arith.constant 0 : index
    %c0_9 = arith.constant 0 : index
    %23 = vector.load %arg3[%c0_8, %c0_9] : memref<1x32xf32, #tpu.memory_space<vmem>>, vector<1x32xf32>
    %24 = vector.shape_cast %23 : vector<1x32xf32> to vector<1x1x32xf32>
    %25 = vector.broadcast %24 : vector<1x1x32xf32> to vector<2x8x32xf32>
    %26 = arith.addf %22, %25 : vector<2x8x32xf32>
    %c0_10 = arith.constant 0 : index
    %c0_11 = arith.constant 0 : index
    %27 = vector.load %arg4[%c0_10, %c0_11] : memref<1x32xf32, #tpu.memory_space<vmem>>, vector<1x32xf32>
    %28 = vector.shape_cast %27 : vector<1x32xf32> to vector<1x1x32xf32>
    %29 = vector.broadcast %28 : vector<1x1x32xf32> to vector<2x8x32xf32>
    %30 = arith.mulf %26, %29 : vector<2x8x32xf32>
    %cst_12 = arith.constant dense<0.000000e+00> : vector<2x8xf32>
    %31 = vector.multi_reduction <add>, %30, %cst_12 [2] : vector<2x8x32xf32> to vector<2x8xf32>
    %c0_13 = arith.constant 0 : index
    %c0_14 = arith.constant 0 : index
    %32 = vector.load %arg5[%c0_13, %c0_14] : memref<1x8xf32, #tpu.memory_space<vmem>>, vector<1x8xf32>
    %33 = vector.broadcast %32 : vector<1x8xf32> to vector<2x8xf32>
    %34 = arith.addf %31, %33 : vector<2x8xf32>
    %35 = math.tanh %34 : vector<2x8xf32>
    %36 = math.exp %35 : vector<2x8xf32>
    %c0_15 = arith.constant 0 : index
    %c0_16 = arith.constant 0 : index
    %37 = vector.load %arg6[%c0_15, %c0_16] : memref<2x8xf32, #tpu.memory_space<vmem>>, vector<2x8xf32>
    %38 = arith.mulf %36, %37 : vector<2x8xf32>
    %cst_17 = arith.constant dense<0.000000e+00> : vector<2xf32>
    %39 = vector.multi_reduction <add>, %38, %cst_17 [1] : vector<2x8xf32> to vector<2xf32>
    %40 = vector.shape_cast %39 : vector<2xf32> to vector<2x1xf32>
    %cst_18 = arith.constant 1.000000e-10 : f32
    %41 = vector.broadcast %cst_18 : f32 to vector<2x1xf32>
    %42 = arith.maximumf %40, %41 : vector<2x1xf32>
    %43 = vector.broadcast %42 : vector<2x1xf32> to vector<2x8xf32>
    %44 = arith.divf %38, %43 : vector<2x8xf32>
    %cst_19 = arith.constant 1.000000e-10 : f32
    %45 = vector.broadcast %cst_19 : f32 to vector<2x8xf32>
    %46 = arith.addf %44, %45 : vector<2x8xf32>
    %47 = vector.shape_cast %46 : vector<2x8xf32> to vector<2x1x8xf32>
    %48 = arith.truncf %47 : vector<2x1x8xf32> to vector<2x1x8xbf16>
    %49 = arith.truncf %26 : vector<2x8x32xf32> to vector<2x8x32xbf16>
    "tpu.trace_start"() <{level = 10 : i32, message = "bqs,bsh->bqh"}> : () -> ()
    %cst_20 = arith.constant dense<0.000000e+00> : vector<2x1x32xf32>
    %50 = tpu.matmul %48, %49, %cst_20 {dimension_numbers = #tpu.dot_dimension_numbers<[2], [1], [1], [2], [0, 0, 0, 1, 1, 2], [0], [0]>} : vector<2x1x8xbf16>, vector<2x8x32xbf16>, vector<2x1x32xf32> -> vector<2x1x32xf32>
    "tpu.trace_stop"() : () -> ()
    %51 = vector.shape_cast %50 : vector<2x1x32xf32> to vector<2x32xf32>
    %cst_21 = arith.constant dense<0xFF800000> : vector<2x32xf32>
    %52 = vector.multi_reduction <maximumf>, %26, %cst_21 [1] : vector<2x8x32xf32> to vector<2x32xf32>
    %53 = arith.truncf %52 : vector<2x32xf32> to vector<2x32xbf16>
    %c0_22 = arith.constant 0 : index
    %c0_23 = arith.constant 0 : index
    %54 = vector.load %arg7[%c0_22, %c0_23] : memref<32x128xbf16, #tpu.memory_space<vmem>>, vector<32x128xbf16>
    %cst_24 = arith.constant dense<0.000000e+00> : vector<2x128xf32>
    %55 = tpu.matmul %53, %54, %cst_24 {dimension_numbers = #tpu.dot_dimension_numbers<[1], [0], [0], [1], [0, 0, 1, 1], [], []>} : vector<2x32xbf16>, vector<32x128xbf16>, vector<2x128xf32> -> vector<2x128xf32>
    %56 = arith.truncf %51 : vector<2x32xf32> to vector<2x32xbf16>
    %c0_25 = arith.constant 0 : index
    %c0_26 = arith.constant 0 : index
    %57 = vector.load %arg8[%c0_25, %c0_26] : memref<32x128xbf16, #tpu.memory_space<vmem>>, vector<32x128xbf16>
    %cst_27 = arith.constant dense<0.000000e+00> : vector<2x128xf32>
    %58 = tpu.matmul %56, %57, %cst_27 {dimension_numbers = #tpu.dot_dimension_numbers<[1], [0], [0], [1], [0, 0, 1, 1], [], []>} : vector<2x32xbf16>, vector<32x128xbf16>, vector<2x128xf32> -> vector<2x128xf32>
    %59 = arith.addf %55, %58 : vector<2x128xf32>
    %c0_28 = arith.constant 0 : index
    %c0_29 = arith.constant 0 : index
    %60 = vector.load %arg9[%c0_28, %c0_29] : memref<1x128xf32, #tpu.memory_space<vmem>>, vector<1x128xf32>
    %61 = vector.broadcast %60 : vector<1x128xf32> to vector<2x128xf32>
    %62 = arith.addf %59, %61 : vector<2x128xf32>
    %c0_30 = arith.constant 0 : index
    %c0_31 = arith.constant 0 : index
    %63 = vector.load %arg10[%c0_30, %c0_31] : memref<2x128xf32, #tpu.memory_space<vmem>>, vector<2x128xf32>
    tpu.vector_store %arg10[%c0_30, %c0_31], %62 {strides = array<i32>} : memref<2x128xf32, #tpu.memory_space<vmem>>, vector<2x128xf32>,
    return
  }
  func.func @transform_0(%arg0: i32) -> (i32, i32, i32) {
    %c0_i32 = arith.constant 0 : i32
    %c0_i32_0 = arith.constant 0 : i32
    %c0_i32_1 = arith.constant 0 : i32
    %c0_i32_2 = arith.constant 0 : i32
    return %c0_i32, %c0_i32_0, %c0_i32_1 : i32, i32, i32
  }
  func.func @transform_1(%arg0: i32) -> (i32, i32) {
    %c0_i32 = arith.constant 0 : i32
    %c0_i32_0 = arith.constant 0 : i32
    %c0_i32_1 = arith.constant 0 : i32
    return %c0_i32, %c0_i32_0 : i32, i32
  }
  func.func @transform_2(%arg0: i32) -> (i32, i32) {
    %c0_i32 = arith.constant 0 : i32
    %c0_i32_0 = arith.constant 0 : i32
    %c0_i32_1 = arith.constant 0 : i32
    return %c0_i32, %c0_i32_0 : i32, i32
  }
  func.func @transform_3(%arg0: i32) -> (i32, i32) {
    %c0_i32 = arith.constant 0 : i32
    %c0_i32_0 = arith.constant 0 : i32
    %c0_i32_1 = arith.constant 0 : i32
    return %c0_i32, %c0_i32_0 : i32, i32
  }
  func.func @transform_4(%arg0: i32) -> (i32, i32) {
    %c0_i32 = arith.constant 0 : i32
    %c0_i32_0 = arith.constant 0 : i32
    %c0_i32_1 = arith.constant 0 : i32
    return %c0_i32, %c0_i32_0 : i32, i32
  }
  func.func @transform_5(%arg0: i32) -> (i32, i32) {
    %c0_i32 = arith.constant 0 : i32
    %c0_i32_0 = arith.constant 0 : i32
    %c0_i32_1 = arith.constant 0 : i32
    return %c0_i32, %c0_i32_0 : i32, i32
  }
  func.func @transform_6(%arg0: i32) -> (i32, i32) {
    %c0_i32 = arith.constant 0 : i32
    %c0_i32_0 = arith.constant 0 : i32
    %c0_i32_1 = arith.constant 0 : i32
    return %c0_i32, %c0_i32_0 : i32, i32
  }
  func.func @transform_7(%arg0: i32) -> (i32, i32) {
    %c0_i32 = arith.constant 0 : i32
    %c0_i32_0 = arith.constant 0 : i32
    %c0_i32_1 = arith.constant 0 : i32
    return %c0_i32, %c0_i32_0 : i32, i32
  }
  func.func @transform_8(%arg0: i32) -> (i32, i32) {
    %c0_i32 = arith.constant 0 : i32
    %c0_i32_0 = arith.constant 0 : i32
    %c0_i32_1 = arith.constant 0 : i32
    return %c0_i32, %c0_i32_0 : i32, i32
  }
  func.func @transform_9(%arg0: i32) -> (i32, i32) {
    %c0_i32 = arith.constant 0 : i32
    %c0_i32_0 = arith.constant 0 : i32
    %c0_i32_1 = arith.constant 0 : i32
    return %c0_i32, %c0_i32_0 : i32, i32
  }
}

</mosaic_0001>

<bundles_post_ra>
// kernel: forward.5
= control target key start
LH: loop header
LB: loop body
LE: loop exit
PB: predicated region body
PF: predicated region fallthrough
CT: control target
= control target key end

     0   :  { %8 = vsyncpa [#allocation4], 0  ;;  %s334_s12 = smov [#allocation3]   ;;  %s414_s0 = inlined_call_operand.hbm [shape: f32[16,256], index: 0, kind: input, shape index: {}]   ;;  %s415_s1 = inlined_call_operand.vmem [shape: bf16[256,128], index: 1, kind: input, shape index: {}]   ;;  %s416_s2 = inlined_call_operand.vmem [shape: f32[1,128], index: 2, kind: input, shape index: {}]   ;;  %s417_s3 = inlined_call_operand.vmem [shape: bf16[16,128], index: 3, kind: output, shape index: {}]  }
   0x1   :  { %s14_s13 = sshll.u32 %s334_s12, 4  ;;  %s15_s13 = int_to_ptr.vmem [resolvable:$true] %s14_s13 }
   0x2   :  { %s320_s14 = scalar_lea.vmem %s15_s13, 512  ;;  %p325_p1 = scmp.lt.s32.totalorder %s15_s13, %s15_s13 }
   0x3   :  { %p321_p0 = scmp.ne.s32.totalorder %s15_s13, %s320_s14  ;;  %p326_p2 = scmp.lt.s32.totalorder %s320_s14, %s320_s14 }
   0x5   :  { %p327_p3 = por %p326_p2, %p325_p1 }
   0x7   :  { %p328_p4 = pnand %p327_p3, %p321_p0 }
   0x9   :  { %331 = shalt.err (!%p328_p4)
}
   0xa   :  { %s335_s15 = smov 256   ;;  %s336_s16 = smov 16  }
   0xb   :  { %20 = dma.hbm_to_vmem [thread:$0]  %s414_s0, 512, %s15_s13, [#allocation4], %s335_s15, %s335_s15, %s336_s16  }
   0xc   :  { %332 = dma.done.wait [#allocation4], 512  }
   0xd   :  { %333 = vsyncadd [#allocation4], 4294966784  ;;  %v296_v0 = vld [vmem:[%s415_s1 + $0x78] sm:$0xff]   ;;  %v298_v2 = vld [vmem:[%s415_s1 + $0x70] sm:$0xff]  }
   0xe   :  { %v297_v1 = vld [vmem:[%s415_s1 + $0x38] sm:$0xff]   ;;  %271 = vmatprep.subr.bf16.mxu0 %v296_v0  ;;  %v299_v3 = vld [vmem:[%s415_s1 + $0x30] sm:$0xff]   ;;  %v300_v4 = vld [vmem:[%s415_s1 + $0x68] sm:$0xff]  }
   0xf   :  { %272 = vmatpush3.bf16.msra.mxu0 %v297_v1  ;;  %v301_v5 = vld [vmem:[%s415_s1 + $0x28] sm:$0xff]   ;;  %v302_v6 = vld [vmem:[%s415_s1 + $0x60] sm:$0xff]   ;;  %v304_v8 = vld [vmem:[%s415_s1 + $0x58] sm:$0xff]  }
  0x10   :  { %273 = vmatprep.subr.bf16.mxu0 %v298_v2  ;;  %v303_v7 = vld [vmem:[%s415_s1 + $0x20] sm:$0xff]   ;;  %v305_v9 = vld [vmem:[%s415_s1 + $0x18] sm:$0xff]   ;;  %v306_v10 = vld [vmem:[%s415_s1 + $0x50] sm:$0xff]  }
  0x11   :  { %v38_v11 = vld [vmem:[#allocation3 + $0x8] sm:$0xff]  ;;  %v40_v12 = vld [vmem:[#allocation3 + $0x18] sm:$0xff]  ;;  %v307_v14 = vld [vmem:[%s415_s1 + $0x10] sm:$0xff]  }
  0x12   :  { %v42_v13 = vpack.c.bf16 %v40_v12, %v38_v11  ;;  %v308_v15 = vld [vmem:[%s415_s1 + $0x48] sm:$0xff]   ;;  %v310_v17 = vld [vmem:[%s415_s1 + $0x40] sm:$0xff]   ;;  %v39_v20 = vld [vmem:[#allocation3 + $0x10] sm:$0xff] }
  0x13   :  { %274 = vmatpush3.bf16.msra.mxu0 %v299_v3  ;;  %v309_v16 = vld [vmem:[%s415_s1 + $0x8] sm:$0xff]   ;;  %v311_v18 = vld [vmem:[%s415_s1] sm:$0xff]  }
  0x14   :  { %275 = vmatprep.subr.bf16.mxu0 %v300_v4  ;;  %203 = vmatprep.mubr.bf16.mxu0 %v42_v13  ;;  %v37_v19 = vld [vmem:[#allocation3] sm:$0xff] }
  0x15   :  { %v41_v21 = vpack.c.bf16 %v39_v20, %v37_v19  ;;  %v261_v26 = vld [vmem:[%s416_s2] ss:$0 sm:$0xff] }
  0x17   :  { %276 = vmatpush3.bf16.msra.mxu0 %v301_v5 }
  0x18   :  { %277 = vmatprep.subr.bf16.mxu0 %v302_v6 }
  0x1b   :  { %278 = vmatpush3.bf16.msra.mxu0 %v303_v7 }
  0x1c   :  { %279 = vmatprep.subr.bf16.mxu0 %v304_v8 }
  0x1f   :  { %280 = vmatpush3.bf16.msra.mxu0 %v305_v9 }
  0x20   :  { %281 = vmatprep.subr.bf16.mxu0 %v306_v10 }
  0x23   :  { %282 = vmatpush3.bf16.msra.mxu0 %v307_v14 }
  0x24   :  { %283 = vmatprep.subr.bf16.mxu0 %v308_v15 }
  0x27   :  { %284 = vmatpush3.bf16.msra.mxu0 %v309_v16 }
  0x28   :  { %285 = vmatprep.subr.bf16.mxu0 %v310_v17 }
  0x2b   :  { %286 = vmatpush3.bf16.msra.mxu0 %v311_v18 }
  0x2e   :  { %204 = vmatmul.mubr.bf16.vlgmr.msra.gmra.mxu0 %v41_v21 }
  0xee   :  { %v287_v22 = vpop.f32.mrf.mxu0 }
  0xf0   :  { %v288_v23 = vpop.f32.mrf.mxu0 }
  0xf1   :  { %v289_v25 = vadd.f32 %v288_v23, %v287_v22 }
  0xf2   :  { %v290_v24 = vpop.f32.mrf.mxu0 }
  0xf3   :  { %v228_v29 = vadd.f32 %v289_v25, %v261_v26 }
  0xf4   :  { %v291_v27 = vpop.f32.mrf.mxu0 }
  0xf5   :  { %v292_v28 = vadd.f32 %v291_v27, %v290_v24 }
  0xf7   :  { %v229_v30 = vadd.f32 %v292_v28, %v261_v26 }
  0xf9   :  { %v269_v31 = vpack.c.bf16 %v229_v30, %v228_v29 }
  0xfb   :  { %270 = vst [vmem:[%s417_s3] sm:$0xff] %v269_v31  }
  0xfc   :  { %244 = vsyncpa [#allocation4], 1 }

// kernel: forward.6
= control target key start
LH: loop header
LB: loop body
LE: loop exit
PB: predicated region body
PF: predicated region fallthrough
CT: control target
= control target key end

     0   :  { %vm19_vm0 = vcmask 523264   ;;  %v225_v0 = vmov 0.0   ;;  %vm226_vm1 = vmmov 0   ;;  %vm164_vm2 = vcmask 519168   ;;  %s287_s1 = inlined_call_operand.vmem [shape: bf16[128,64], index: 1, kind: input, shape index: {}]   ;;  %s288_s0 = inlined_call_operand.vmem [shape: bf16[16,128], index: 0, kind: input, shape index: {}]   ;;  %s289_s2 = inlined_call_operand.vmem [shape: f32[1,64], index: 2, kind: input, shape index: {}]   ;;  %s290_s3 = inlined_call_operand.vmem [shape: bf16[16,64], index: 3, kind: output, shape index: {}]  }
   0x1   :  { %194 = vmatprep.subr.bf16.mxu0 %v225_v0  ;;  %v216_v1 = vld [vmem:[%s287_s1 + $0x38] sm:$0xff]   ;;  %210 = vmatprep.mubr.msk.bf16.mxu0 %vm226_vm1, %v225_v0  ;;  %20 = vst.msk [vmem:[#allocation2] sm:$0xff] %vm19_vm0, %v225_v0  ;;  %21 = vst.msk [vmem:[#allocation2 + $0x8] sm:$0xff] %vm19_vm0, %v225_v0  ;;  %v217_v2 = vld [vmem:[%s287_s1 + $0x30] sm:$0xff]  }
   0x2   :  { %195 = vmatpush3.bf16.msra.mxu0 %v216_v1  ;;  %v218_v3 = vld [vmem:[%s287_s1 + $0x28] sm:$0xff]   ;;  %v219_v4 = vld [vmem:[%s287_s1 + $0x20] sm:$0xff]   ;;  %v220_v5 = vld [vmem:[%s287_s1 + $0x18] sm:$0xff]  }
   0x3   :  { %196 = vmatprep.subr.bf16.mxu0 %v225_v0  ;;  %v221_v6 = vld [vmem:[%s287_s1 + $0x10] sm:$0xff]   ;;  %v222_v7 = vld [vmem:[%s287_s1 + $0x8] sm:$0xff]   ;;  %v223_v8 = vld [vmem:[%s287_s1] sm:$0xff]  }
   0x4   :  { %v224_v9 = vld [vmem:[%s288_s0] sm:$0xff]  }
   0x5   :  { %v180_v18 = vld [vmem:[%s289_s2] ss:$0 sm:$0xff] }
   0x6   :  { %197 = vmatpush3.bf16.msra.mxu0 %v217_v2 }
   0x7   :  { %198 = vmatprep.subr.bf16.mxu0 %v225_v0 }
   0x8   :  { %v22_v10 = vld [vmem:[#allocation2] sm:$0xff]  ;;  %v23_v14 = vld [vmem:[#allocation2 + $0x8] sm:$0xff] }
   0xa   :  { %199 = vmatpush3.bf16.msra.mxu0 %v218_v3 }
   0xb   :  { %200 = vmatprep.subr.bf16.mxu0 %v225_v0 }
   0xe   :  { %201 = vmatpush3.bf16.msra.mxu0 %v219_v4 }
   0xf   :  { %202 = vmatprep.subr.bf16.mxu0 %v225_v0 }
  0x12   :  { %203 = vmatpush3.bf16.msra.mxu0 %v220_v5 }
  0x13   :  { %204 = vmatprep.subr.bf16.mxu0 %v225_v0 }
  0x16   :  { %205 = vmatpush3.bf16.msra.mxu0 %v221_v6 }
  0x17   :  { %206 = vmatprep.subr.bf16.mxu0 %v225_v0 }
  0x1a   :  { %207 = vmatpush3.bf16.msra.mxu0 %v222_v7 }
  0x1b   :  { %208 = vmatprep.subr.bf16.mxu0 %v225_v0 }
  0x1e   :  { %209 = vmatpush3.bf16.msra.mxu0 %v223_v8 }
  0x21   :  { %211 = vmatmul.mubr.bf16.vlgmr.msra.gmra.mxu0 %v224_v9 }
  0xe1   :  { %v130_v11 = vpop.f32.mrf.mxu0 }
  0xe2   :  { %v137_v12 = vadd.f32 %v130_v11, %v22_v10 }
  0xe3   :  { %v212_v13 = vpop.f32.mrf.mxu0 }
  0xe4   :  { %140 = vst.msk [vmem:[#allocation2] sm:$0xff] %vm19_vm0, %v137_v12 }
  0xe5   :  { %v133_v15 = vpop.f32.mrf.mxu0 }
  0xe6   :  { %v138_v16 = vadd.f32 %v133_v15, %v23_v14 }
  0xe7   :  { %v213_v17 = vpop.f32.mrf.mxu0 }
  0xe8   :  { %141 = vst.msk [vmem:[#allocation2 + $0x8] sm:$0xff] %vm19_vm0, %v138_v16 }
  0xeb   :  { %v145_v19 = vld [vmem:[#allocation2] sm:$0xff] }
  0xec   :  { %v154_v20 = vadd.f32 %v180_v18, %v145_v19 }
  0xee   :  { %v183_v21 = vpack.c.bf16 %v154_v20, %v154_v20 }
  0xef   :  { %v146_v22 = vld [vmem:[#allocation2 + $0x8] sm:$0xff] }
  0xf0   :  { %165 = vst.msk [vmem:[%s290_s3] sm:$0xf] %vm164_vm2, %v183_v21  ;;  %v155_v23 = vadd.f32 %v180_v18, %v146_v22 }
  0xf2   :  { %v184_v24 = vpack.c.bf16 %v155_v23, %v155_v23 }
  0xf4   :  { %166 = vst.msk [vmem:[%s290_s3 + $0x4] sm:$0xf] %vm164_vm2, %v184_v24 }

// kernel: forward.7
= control target key start
LH: loop header
LB: loop body
LE: loop exit
PB: predicated region body
PF: predicated region fallthrough
CT: control target
= control target key end

     0   :  { %vm19_vm0 = vcmask 261120   ;;  %v177_v0 = vmov 0.0   ;;  %vm178_vm1 = vmmov 0   ;;  %vm63_vm2 = vcmask 523264   ;;  %s227_s1 = inlined_call_operand.vmem [shape: bf16[64,32], index: 1, kind: input, shape index: {}]   ;;  %s228_s0 = inlined_call_operand.vmem [shape: bf16[16,64], index: 0, kind: input, shape index: {}]   ;;  %s229_s2 = inlined_call_operand.vmem [shape: f32[1,32], index: 2, kind: input, shape index: {}]   ;;  %s230_s3 = inlined_call_operand.vmem [shape: bf16[16,32], index: 3, kind: output, shape index: {}]  }
   0x1   :  { %158 = vmatprep.subr.bf16.mxu0 %v177_v0  ;;  %v172_v1 = vld [vmem:[%s227_s1 + $0x18] sm:$0xff]   ;;  %166 = vmatprep.mubr.msk.bf16.mxu0 %vm178_vm1, %v177_v0  ;;  %20 = vst.msk [vmem:[#allocation2] sm:$0xff] %vm19_vm0, %v177_v0  ;;  %21 = vst.msk [vmem:[#allocation2 + $0x8] sm:$0xff] %vm19_vm0, %v177_v0  ;;  %v173_v2 = vld [vmem:[%s227_s1 + $0x10] sm:$0xff]   ;;  %vm135_vm3 = vcmask 257024  }
   0x2   :  { %159 = vmatpush3.bf16.msra.mxu0 %v172_v1  ;;  %v174_v3 = vld [vmem:[%s227_s1 + $0x8] sm:$0xff]   ;;  %v175_v4 = vld [vmem:[%s227_s1] sm:$0xff]  }
   0x3   :  { %160 = vmatprep.subr.bf16.mxu0 %v177_v0  ;;  %v176_v5 = vld [vmem:[%s228_s0] sm:$0xff]  }
   0x4   :  { %v148_v14 = vld [vmem:[%s229_s2] ss:$0 sm:$0xff] }
   0x6   :  { %161 = vmatpush3.bf16.msra.mxu0 %v173_v2 }
   0x7   :  { %162 = vmatprep.subr.bf16.mxu0 %v177_v0 }
   0x8   :  { %v22_v6 = vld [vmem:[#allocation2] sm:$0xff]  ;;  %v23_v10 = vld [vmem:[#allocation2 + $0x8] sm:$0xff] }
   0xa   :  { %163 = vmatpush3.bf16.msra.mxu0 %v174_v3 }
   0xb   :  { %164 = vmatprep.subr.bf16.mxu0 %v177_v0 }
   0xe   :  { %165 = vmatpush3.bf16.msra.mxu0 %v175_v4 }
  0x11   :  { %167 = vmatmul.mubr.msk.bf16.vlgmr.msra.gmra.mxu0 %vm63_vm2, %v176_v5 }
  0xd1   :  { %v101_v7 = vpop.f32.mrf.mxu0 }
  0xd2   :  { %v108_v8 = vadd.f32 %v101_v7, %v22_v6 }
  0xd3   :  { %v168_v9 = vpop.f32.mrf.mxu0 }
  0xd4   :  { %111 = vst.msk [vmem:[#allocation2] sm:$0xff] %vm19_vm0, %v108_v8 }
  0xd5   :  { %v104_v11 = vpop.f32.mrf.mxu0 }
  0xd6   :  { %v109_v12 = vadd.f32 %v104_v11, %v23_v10 }
  0xd7   :  { %v169_v13 = vpop.f32.mrf.mxu0 }
  0xd8   :  { %112 = vst.msk [vmem:[#allocation2 + $0x8] sm:$0xff] %vm19_vm0, %v109_v12 }
  0xdb   :  { %v116_v15 = vld [vmem:[#allocation2] sm:$0xff] }
  0xdc   :  { %v125_v16 = vadd.f32 %v148_v14, %v116_v15 }
  0xde   :  { %v151_v17 = vpack.c.bf16 %v125_v16, %v125_v16 }
  0xdf   :  { %v117_v18 = vld [vmem:[#allocation2 + $0x8] sm:$0xff] }
  0xe0   :  { %136 = vst.msk [vmem:[%s230_s3] sm:$0xf] %vm135_vm3, %v151_v17  ;;  %v126_v19 = vadd.f32 %v148_v14, %v117_v18 }
  0xe2   :  { %v152_v20 = vpack.c.bf16 %v126_v19, %v126_v19 }
  0xe4   :  { %137 = vst.msk [vmem:[%s230_s3 + $0x4] sm:$0xf] %vm135_vm3, %v152_v20 }

// kernel: forward.9
= control target key start
LH: loop header
LB: loop body
LE: loop exit
PB: predicated region body
PF: predicated region fallthrough
CT: control target
= control target key end

     0   :  { %vm35_vm0 = vcmask 261120   ;;  %v533_v14 = vmov 0.0   ;;  %vm195_vm1 = vcmask 1043456   ;;  %v116_v48 = vlaneseq  ;;  %s658_s0 = inlined_call_operand.vmem [shape: f32[2,8,32], index: 0, kind: input, shape index: {}]   ;;  %s659_s1 = inlined_call_operand.vmem [shape: f32[1,32], index: 1, kind: input, shape index: {}]   ;;  %s660_s2 = inlined_call_operand.vmem [shape: f32[1,32], index: 2, kind: input, shape index: {}]   ;;  %s661_s3 = inlined_call_operand.vmem [shape: f32[1,32], index: 3, kind: input, shape index: {}]   ;;  %s662_s5 = inlined_call_operand.vmem [shape: f32[2,8], index: 5, kind: input, shape index: {}]   ;;  %s663_s4 = inlined_call_operand.vmem [shape: f32[1,8], index: 4, kind: input, shape index: {}]   ;;  %s664_s6 = inlined_call_operand.vmem [shape: bf16[32,128], index: 6, kind: input, shape index: {}]   ;;  %s665_s7 = inlined_call_operand.vmem [shape: bf16[32,128], index: 7, kind: input, shape index: {}]   ;;  %s666_s8 = inlined_call_operand.vmem [shape: f32[1,128], index: 8, kind: input, shape index: {}]   ;;  %s667_s9 = inlined_call_operand.vmem [shape: f32[2,128], index: 9, kind: output, shape index: {}]  }
   0x1   :  { %v33_v0 = vld [vmem:[%s658_s0] sm:$0xff]  ;;  %v34_v1 = vld [vmem:[%s658_s0 + $0x8] sm:$0xff]  ;;  %480 = vmatprep.subr.bf16.mxu0 %v533_v14  ;;  %486 = vmatprep.subr.bf16.mxu1 %v533_v14  ;;  %vm152_vm2 = vcmask 1041409   ;;  %vm155_vm3 = vcmask 58368   ;;  %vm535_vm4 = vmmov 0   ;;  %vm191_vm5 = vcmask 64512  }
   0x2   :  { %v36_v2 = vsel %vm35_vm0, %v33_v0, 0.0  ;;  %v39_v3 = vsel %vm35_vm0, %v34_v1, 0.0  ;;  %v457_v22 = vld [vmem:[%s659_s1] ss:$0 sm:$0xff]  ;;  %v117_v53 = vshrl.u32 %v116_v48, 7  ;;  %488 = vmatprep.mubr.msk.bf16.mxu1 %vm535_vm4, %v533_v14  ;;  %482 = vmatprep.mubr.msk.bf16.mxu0 %vm535_vm4, %v533_v14 }
   0x3   :  { %37 = vadd.xlane.f32.xlu0 %v36_v2  ;;  %v458_v24 = vld [vmem:[%s660_s2] ss:$0 sm:$0xff] }
   0x4   :  { %v459_v27 = vld [vmem:[%s661_s3] ss:$0 sm:$0xff]  ;;  %v118_v57 = vsub.s32 0, %v117_v53  ;;  %v125_v63 = vsub.s32 1, %v117_v53 }
   0x5   :  { %v114_v58 = vld [vmem:[%s662_s5] sm:$0x3] }
   0x6   :  { %v119_v62 = vrot.slane %v114_v58, %v118_v57  ;;  %v126_v2 = vrot.slane %v114_v58, %v125_v63 }
   0x7   :  { %40 = vadd.xlane.f32.xlu0 %v39_v3  ;;  %v534_v3 = vmov 0  }
   0x8   :  { %512 = vset.pattern.permute.xlu0 %v534_v3  ;;  %511 = vset.pattern.permute.xlu1 %v534_v3 }
  0x8c   :  { %v38_v4 = vpop.xlane.xlu0 %37 }
  0x8d   :  { %v43_v5 = vmul.f32 0.03125, %v38_v4 }
  0x8f   :  { %v45_v6 = vsub.f32 %v33_v0, %v43_v5 }
  0x90   :  { %v41_v7 = vpop.xlane.xlu0 %40 }
  0x91   :  { %v44_v8 = vmul.f32 0.03125, %v41_v7  ;;  %v47_v9 = vmul.f32 %v45_v6, %v45_v6 }
  0x93   :  { %v46_v10 = vsub.f32 %v34_v1, %v44_v8  ;;  %v49_v11 = vsel %vm35_vm0, %v47_v9, 0.0  ;;  %v460_v1 = vld [vmem:[%s663_s4] ss:$0 sm:$0xff] }
  0x94   :  { %50 = vadd.xlane.f32.xlu1 %v49_v11 }
  0x95   :  { %v48_v12 = vmul.f32 %v46_v10, %v46_v10 }
  0x97   :  { %v52_v13 = vsel %vm35_vm0, %v48_v12, 0.0 }
  0x98   :  { %53 = vadd.xlane.f32.xlu1 %v52_v13 }
 0x11d   :  { %v51_v15 = vpop.xlane.xlu1 %50 }
 0x11e   :  { %v55_v16 = vmul.f32 0.03125, %v51_v15 }
 0x120   :  { %v57_v17 = vadd.f32 1e-06, %v55_v16 }
 0x121   :  { %v54_v18 = vpop.xlane.xlu1 %53 }
 0x122   :  { %517 = vrsqrt.f32 %v57_v17  ;;  %v56_v19 = vmul.f32 0.03125, %v54_v18 }
 0x124   :  { %v58_v20 = vadd.f32 1e-06, %v56_v19 }
 0x126   :  { %519 = vrsqrt.f32 %v58_v20  ;;  %v143_v20 = vand.u32 127, %v116_v48  ;;  %v514_v48 = vld [vmem:[%s664_s6] sm:$0xff]  }
 0x12f   :  { %v518_v21 = vpop.eup %517 }
 0x130   :  { %v61_v23 = vmul.f32 %v518_v21, %v45_v6  ;;  %v146_v21 = vsub.s32 %v143_v20, %v117_v53 }
 0x132   :  { %v70_v25 = vmul.f32 %v457_v22, %v61_v23 }
 0x133   :  { %v520_v26 = vpop.eup %519 }
 0x134   :  { %v79_v28 = vadd.f32 %v458_v24, %v70_v25  ;;  %v62_v29 = vmul.f32 %v520_v26, %v46_v10 }
 0x136   :  { %v179_v30 = vpack.c.bf16 %v79_v28, %v79_v28  ;;  %v295_v31 = vsel %vm35_vm0, %v79_v28, -inf  ;;  %v88_v32 = vmul.f32 %v459_v27, %v79_v28  ;;  %v71_v33 = vmul.f32 %v457_v22, %v62_v29 }
 0x137   :  { %v296_v34 = vrot.slane %v295_v31, 4 }
 0x138   :  { %v197_v35 = vsel %vm195_vm1, %v179_v30, 0  ;;  %v90_v36 = vsel %vm35_vm0, %v88_v32, 0.0  ;;  %v80_v37 = vadd.f32 %v458_v24, %v71_v33 }
 0x139   :  { %481 = vmatpush3.bf16.msra.mxu0 %v197_v35  ;;  %v297_v38 = vmax.f32 %v295_v31, %v296_v34  ;;  %91 = vadd.xlane.f32.xlu0 %v90_v36 }
 0x13a   :  { %v180_v39 = vpack.c.bf16 %v80_v37, %v80_v37  ;;  %v302_v40 = vsel %vm35_vm0, %v80_v37, -inf  ;;  %v89_v41 = vmul.f32 %v459_v27, %v80_v37  ;;  %492 = vmatprep.subr.bf16.mxu0 %v533_v14 }
 0x13b   :  { %v298_v42 = vrot.slane %v297_v38, 2  ;;  %v303_v43 = vrot.slane %v302_v40, 4 }
 0x13c   :  { %v253_v44 = vsel %vm195_vm1, %v180_v39, 0  ;;  %v93_v45 = vsel %vm35_vm0, %v89_v41, 0.0 }
 0x13d   :  { %487 = vmatpush3.bf16.msra.mxu1 %v253_v44  ;;  %v304_v46 = vmax.f32 %v302_v40, %v303_v43  ;;  %94 = vadd.xlane.f32.xlu1 %v93_v45  ;;  %v299_v47 = vmax.f32 %v297_v38, %v298_v42  ;;  %v513_v44 = vld [vmem:[%s664_s6 + $0x8] sm:$0xff]  }
 0x13e   :  { %500 = vmatprep.subr.bf16.mxu1 %v533_v14 }
 0x13f   :  { %v305_v49 = vrot.slane %v304_v46, 2  ;;  %v300_v50 = vrot.slane %v299_v47, 1 }
 0x141   :  { %v301_v51 = vmax.f32 %v299_v47, %v300_v50  ;;  %v306_v52 = vmax.f32 %v304_v46, %v305_v49 }
 0x143   :  { %v307_v54 = vrot.slane %v306_v52, 1  ;;  %v309_v56 = vpack.c.bf16 %v301_v51, %v301_v51  ;;  %v515_v51 = vld [vmem:[%s665_s7 + $0x8] sm:$0xff]  }
 0x145   :  { %v308_v55 = vmax.f32 %v306_v52, %v307_v54  ;;  %v385_v60 = vunpack.c.l.b16 %v309_v56  ;;  %v516_v52 = vld [vmem:[%s665_s7] sm:$0xff]  }
 0x147   :  { %v310_v59 = vpack.c.bf16 %v308_v55, %v308_v55 }
 0x149   :  { %v386_v61 = vunpack.c.l.b16 %v310_v59 }
 0x14b   :  { %v619_v0 = vsel %vm152_vm2, %v386_v61, %v385_v60 }
 0x14c   :  { %v388_v50 = vpack.c.b16 %v619_v0, %v619_v0 }
 0x14e   :  { %121 = vbcast.lane.b32.xlu1 %v119_v62, 256 }
 0x14f   :  { %103 = vbcast.lane.b32.xlu0 %v460_v1, 256 }
 0x152   :  { %128 = vbcast.lane.b32.xlu1 %v126_v2, 256 }
 0x1c2   :  { %v92_v4 = vpop.xlane.xlu0 %91 }
 0x1c6   :  { %v95_v5 = vpop.xlane.xlu1 %94  ;;  %v104_v6 = vpop.permute.xlu0 %103 }
 0x1c7   :  { %v106_v7 = vadd.f32 %v104_v6, %v92_v4  ;;  %v107_v8 = vadd.f32 %v104_v6, %v95_v5 }
 0x1c9   :  { %521 = vtanh.f32 %v106_v7 }
 0x1ca   :  { %523 = vtanh.f32 %v107_v8  ;;  %v122_v13 = vpop.permute.xlu1 %121  ;;  %v469_v8 = vld [vmem:[%s666_s8] ss:$0 sm:$0xff] }
 0x1ce   :  { %v129_v15 = vpop.permute.xlu1 %128 }
 0x1d6   :  { %v522_v9 = vpop.eup %521 }
 0x1d7   :  { %v524_v10 = vpop.eup %523  ;;  %v110_v11 = vmul.f32 1.442695, %v522_v9 }
 0x1d8   :  { %v112_v12 = vmul.f32 1.442695, %v524_v10 }
 0x1d9   :  { %525 = vpow2.f32 %v110_v11 }
 0x1da   :  { %527 = vpow2.f32 %v112_v12 }
 0x1e6   :  { %v526_v16 = vpop.eup %525 }
 0x1e7   :  { %v528_v17 = vpop.eup %527  ;;  %v132_v18 = vmul.f32 %v526_v16, %v122_v13 }
 0x1e8   :  { %v133_v19 = vmul.f32 %v528_v17, %v129_v15 }
 0x1e9   :  { %137 = vperm.xlu1 %511, %v132_v18  }
 0x1ea   :  { %140 = vperm.xlu0 %512, %v133_v19  }
 0x264   :  { %v138_v22 = vpop.permute.xlu1 %137 }
 0x265   :  { %v141_v23 = vpop.permute.xlu0 %140  ;;  %v147_v24 = vrot.slane %v138_v22, %v146_v21 }
 0x266   :  { %v151_v25 = vrot.slane %v141_v23, %v146_v21 }
 0x268   :  { %v153_v26 = vsel %vm152_vm2, %v151_v25, %v147_v24 }
 0x269   :  { %v156_v27 = vsel %vm155_vm3, %v153_v26, 0.0 }
 0x26a   :  { %157 = vadd.xlane.f32.xlu1 %v156_v27 }
 0x2f3   :  { %v158_v28 = vpop.xlane.xlu1 %157 }
 0x2f4   :  { %v159_v29 = vmax.f32 %v158_v28, 1e-10 }
 0x2f6   :  { %v164_v30 = vrot.slane %v159_v29, %v118_v57  ;;  %v168_v31 = vrot.slane %v159_v29, %v125_v63 }
 0x2f8   :  { %529 = vrcp.f32 %v164_v30 }
 0x2f9   :  { %531 = vrcp.f32 %v168_v31 }
 0x305   :  { %v530_v32 = vpop.eup %529 }
 0x306   :  { %v532_v33 = vpop.eup %531  ;;  %v172_v34 = vmul.f32 %v530_v32, %v132_v18 }
 0x307   :  { %v174_v35 = vmul.f32 %v532_v33, %v133_v19 }
 0x308   :  { %v175_v37 = vadd.f32 1e-10, %v172_v34 }
 0x309   :  { %v176_v36 = vadd.f32 1e-10, %v174_v35 }
 0x30a   :  { %v177_v40 = vpack.c.bf16 %v175_v37, %v175_v37 }
 0x30b   :  { %v178_v38 = vpack.c.bf16 %v176_v36, %v176_v36 }
 0x30c   :  { %v182_v41 = vunpack.c.l.b16 %v177_v40 }
 0x30d   :  { %v240_v39 = vunpack.c.l.b16 %v178_v38 }
 0x30f   :  { %242 = vperm.xlu0 %512, %v240_v39  }
 0x313   :  { %184 = vperm.xlu0 %512, %v182_v41  }
 0x38a   :  { %v243_v42 = vpop.permute.xlu0 %242 }
 0x38b   :  { %v247_v43 = vrot.slane %v243_v42, %v146_v21 }
 0x38d   :  { %v248_v45 = vpack.c.b16 %v247_v43, %v247_v43 }
 0x38e   :  { %v185_v46 = vpop.permute.xlu0 %184 }
 0x38f   :  { %v189_v47 = vrot.slane %v185_v46, %v146_v21  ;;  %489 = vmatmul.mubr.msk.bf16.vlgmr.msra.gmra.mxu1 %vm191_vm5, %v248_v45 }
 0x390   :  { %501 = vmatpush3.bf16.msra.mxu1 %v513_v44  ;;  %504 = vmatprep.mubr.msk.bf16.mxu1 %vm535_vm4, %v533_v14 }
 0x391   :  { %v190_v49 = vpack.c.b16 %v189_v47, %v189_v47  ;;  %502 = vmatprep.subr.bf16.mxu1 %v533_v14 }
 0x393   :  { %483 = vmatmul.mubr.msk.bf16.vlgmr.msra.gmra.mxu0 %vm191_vm5, %v190_v49 }
 0x394   :  { %503 = vmatpush3.bf16.msra.mxu1 %v514_v48  ;;  %496 = vmatprep.mubr.msk.bf16.mxu0 %vm535_vm4, %v533_v14 }
 0x395   :  { %493 = vmatpush3.bf16.msra.mxu0 %v515_v51 }
 0x396   :  { %494 = vmatprep.subr.bf16.mxu0 %v533_v14 }
 0x397   :  { %505 = vmatmul.mubr.msk.bf16.vlgmr.msra.gmra.mxu1 %vm35_vm0, %v388_v50 }
 0x399   :  { %495 = vmatpush3.bf16.msra.mxu0 %v516_v52 }
 0x44f   :  { %v289_v53 = vpop.f32.mrf.mxu1 }
 0x450   :  { %v316_v54 = vpack.c.bf16 %v289_v53, %v289_v53 }
 0x451   :  { %v490_v55 = vpop.f32.mrf.mxu1 }
 0x452   :  { %v324_v56 = vunpack.c.l.b16 %v316_v54 }
 0x453   :  { %v233_v57 = vpop.f32.mrf.mxu0  ;;  %v292_v58 = vpop.f32.mrf.mxu1 }
 0x454   :  { %v315_v59 = vpack.c.bf16 %v233_v57, %v233_v57  ;;  %v325_v62 = vrot.slane %v324_v56, 7 }
 0x455   :  { %v484_v60 = vpop.f32.mrf.mxu0  ;;  %v491_v61 = vpop.f32.mrf.mxu1 }
 0x456   :  { %v323_v63 = vunpack.c.l.b16 %v315_v59 }
 0x457   :  { %v236_v0 = vpop.f32.mrf.mxu0  ;;  %v438_v1 = vpop.f32.mrf.mxu1 }
 0x458   :  { %v326_v14 = vsel %vm152_vm2, %v325_v62, %v323_v63 }
 0x459   :  { %v327_v2 = vpack.c.b16 %v326_v14, %v326_v14  ;;  %v485_v3 = vpop.f32.mrf.mxu0  ;;  %v506_v4 = vpop.f32.mrf.mxu1 }
 0x45b   :  { %497 = vmatmul.mubr.msk.bf16.vlgmr.msra.gmra.mxu0 %vm35_vm0, %v327_v2  ;;  %v441_v5 = vpop.f32.mrf.mxu1 }
 0x45d   :  { %v507_v6 = vpop.f32.mrf.mxu1 }
 0x51b   :  { %v377_v7 = vpop.f32.mrf.mxu0 }
 0x51c   :  { %v439_v9 = vadd.f32 %v438_v1, %v377_v7 }
 0x51d   :  { %v498_v10 = vpop.f32.mrf.mxu0 }
 0x51e   :  { %v451_v11 = vadd.f32 %v469_v8, %v439_v9 }
 0x51f   :  { %v380_v12 = vpop.f32.mrf.mxu0 }
 0x520   :  { %452 = vst [vmem:[%s667_s9] sm:$0x3] %v451_v11 }
 0x521   :  { %v499_v13 = vpop.f32.mrf.mxu0 }

// kernel: forward.8
= control target key start
LH: loop header
LB: loop body
LE: loop exit
PB: predicated region body
PF: predicated region fallthrough
CT: control target
= control target key end

     0   :  { %s2199_s29 = smov 0   ;;  %s2201_s30 = smov 0   ;;  %s2484_s0 = inlined_call_operand.vmem [shape: bf16[2,8,32], index: 0, kind: input, shape index: {}]   ;;  %s2485_s1 = inlined_call_operand.vmem [shape: f32[1,8,32], index: 1, kind: input, shape index: {}]   ;;  %s2486_s2 = inlined_call_operand.vmem [shape: f32[2,1,32], index: 2, kind: input, shape index: {}]   ;;  %s2487_s3 = inlined_call_operand.vmem [shape: f32[2,1,32], index: 3, kind: input, shape index: {}]   ;;  %s2488_s4 = inlined_call_operand.vmem [shape: bf16[2,32,96], index: 4, kind: input, shape index: {}]   ;;  %s2489_s5 = inlined_call_operand.vmem [shape: f32[2,1,96], index: 5, kind: input, shape index: {}]   ;;  %s2490_s6 = inlined_call_operand.vmem [shape: bf16[2,32,32], index: 6, kind: input, shape index: {}]   ;;  %s2491_s7 = inlined_call_operand.vmem [shape: f32[2,1,32], index: 7, kind: input, shape index: {}]   ;;  %s2492_s8 = inlined_call_operand.vmem [shape: f32[2,1,32], index: 8, kind: input, shape index: {}]   ;;  %s2493_s9 = inlined_call_operand.vmem [shape: f32[2,1,32], index: 9, kind: input, shape index: {}]   ;;  %s2494_s10 = inlined_call_operand.vmem [shape: bf16[2,32,64], index: 10, kind: input, shape index: {}]   ;;  %s2495_s11 = inlined_call_operand.vmem [shape: f32[2,1,64], index: 11, kind: input, shape index: {}]   ;;  %s2496_s12 = inlined_call_operand.vmem [shape: bf16[2,64,32], index: 12, kind: input, shape index: {}]   ;;  %s2497_s13 = inlined_call_operand.vmem [shape: f32[2,1,32], index: 13, kind: input, shape index: {}]   ;;  %s2498_s14 = inlined_call_operand.vmem [shape: f32[2,8,32], index: 14, kind: output, shape index: {}]  }
   0x1   :  { %2503 = sst [smem:[#allocation8_spill]] %s2484_s0  ;;  %s2203_s15 = smov 0  }
   0x2   :  { %2504 = sst [smem:[#allocation9_spill]] %s2485_s1  ;;  %s2205_s16 = smov 0  }
   0x3   :  { %2505 = sst [smem:[#allocation10_spill]] %s2488_s4  ;;  %s2207_s17 = smov 0  }
   0x4   :  { %2506 = sst [smem:[#allocation11_spill]] %s2490_s6 }
   0x5   :  { %2507 = sst [smem:[#allocation12_spill]] %s2492_s8 }
   0x6   :  { %2508 = sst [smem:[#allocation13_spill]] %s2496_s12 }
   0x7   :  { %2509 = sst [smem:[#allocation14_spill]] %s2498_s14 }
   0x8 LB: > { %2510 = sst [smem:[#allocation2_spill]] %s2093_s29  ;;  %s33_s18 = sadd.s32 1, %s2101_s15  ;;  %s2109_s17 = sphi %s2207_s17, %s24_s17   ;;  %s2105_s16 = sphi %s2205_s16, %s2535_s16   ;;  %s2101_s15 = sphi %s2203_s15, %s2534_s15   ;;  %s2097_s30 = sphi %s2201_s30, %s2533_s30   ;;  %s2093_s29 = sphi %s2199_s29, %s2532_s29  }
   0x9   : > { %2511 = sst [smem:[#allocation3_spill]] %s2101_s15  ;;  %s36_s19 = sadd.s32 1, %s2105_s16 }
   0xa   : > { %2512 = sst [smem:[#allocation4_spill]] %s2105_s16  ;;  %p34_p0 = scmp.ge.s32.totalorder %s33_s18, 2 }
   0xb   : > { %2513 = sst [smem:[#allocation5_spill]] %s2109_s17  ;;  %p1804_p1 = scmp.ge.s32.totalorder %s2109_s17, 1 }
   0xc   : > { %p527_p2 = scmp.lt.s32.totalorder %s2109_s17, 5  ;;  %s2537_s18 = smov (%p34_p0, %s33_s18), 0 }
   0xd   : > { %2514 = sst [smem:[#allocation6_spill]] %s2537_s18  ;;  %s2539_s19 = smov (!%p34_p0, %s36_s19), %s2105_s16 }
   0xe   : > { %p528_p3 = pnand %p1804_p1, %p527_p2  ;;  %p38_p4 = scmp.ge.s32.totalorder %s2539_s19, 2 }
   0xf   : > { %p615_p5 = scmp.lt.s32.totalorder (!%p528_p3), %s2097_s30, 1  ;;  %p619_p6 = scmp.lt.s32.totalorder (!%p528_p3), %s2093_s29, 1 }
  0x10   : > { %s2541_s19 = smov (%p38_p4, %s2539_s19), 0  ;;  %531 = sbr.rel (%p528_p3) target bundleno = 3555 (0xde3), region = 76 }
  0x11   : > { %2515 = sst [smem:[#allocation7_spill]] %s2541_s19 }
  0x12   : > { %s2516_s0 = sld [smem:[#allocation8_spill]] (!%p528_p3) }
  0x13   : > { %s2517_s4 = sld [smem:[#allocation10_spill]] (!%p528_p3) }
  0x14   : > { %s2518_s6 = sld [smem:[#allocation11_spill]] (!%p528_p3) }
  0x15   : > { %s2543_s30 = smov (!%p615_p5, %s2097_s30), 1  ;;  %s2520_s28 = sld [smem:[#allocation13_spill]] }
  0x16   : > { %s2233_s20 = scalar_select %p619_p6, %s2093_s29, 1 }
  0x17   : > { %s1805_s21 = sshll.u32 %s2543_s30, 2  ;;  %s1814_s22 = sshll.u32 %s2543_s30, 3 }
  0x18   : > { %s618_s25 = scalar_lea.vmem %s2516_s0, %s1805_s21  ;;  %s1849_s15 = sshll.u32 %s2233_s20, 4 }
  0x19   : > { %s2250_s29 = scalar_lea.vmem %s2517_s4, %s1849_s15  ;;  %s2276_s30 = scalar_lea.vmem %s2494_s10, %s1849_s15 }
  0x1a   : > { %s2259_s24 = scalar_lea.vmem %s2518_s6, %s1849_s15  ;;  %s654_s12 = scalar_lea.vmem %s2495_s11, %s2233_s20 }
  0x1b   : > { %s1852_s6 = sshll.u32 %s2233_s20, 5  ;;  %s662_s18 = scalar_lea.vmem %s2497_s13, %s2233_s20 }
  0x1c   : > { %s2290_s8 = scalar_lea.vmem %s2520_s28, %s1852_s6  ;;  %s2521_s0 = sld [smem:[#allocation14_spill]] }
  0x1d   : > { %s2522_s15 = sld [smem:[#allocation2_spill]] }
  0x22   : > { %s2295_s4 = scalar_lea.vmem %s2521_s0, %s1814_s22 }
  0x23   : > { %p1815_p7 = scmp.ne.s32.totalorder %s2522_s15, 0 }
  0x24   : > { %s2523_s21 = sld [smem:[#allocation9_spill]] (!%p1815_p7) }
  0x25   : > { %671 = sbr.rel (%p1815_p7) target bundleno = 48 (0x30), region = 80 }
  0x2a   : > { %v672_v0 = vld [vmem:[%s618_s25] sm:$0xf]  ;;  %vm676_vm0 = vcmask 261120  }
  0x2b   : > { %v674_v1 = vld [vmem:[%s2523_s21] sm:$0xff]  ;;  %v673_v2 = vunpack.c.l.bf16 %v672_v0 }
  0x2d   : > { %v675_v3 = vadd.f32 %v674_v1, %v673_v2 }
  0x2f   : > { %677 = vst.msk [vmem:[%s2295_s4] sm:$0xff] %vm676_vm0, %v675_v3 }
  0x30 PF: > { %vm681_vm1 = vcmask 261120   ;;  %v2041_v11 = vld [vmem:[%s2250_s29 + $0x8] sm:$0xff]   ;;  %v2111_v12 = vmov 0.0   ;;  %vm2112_vm2 = vmmov 0   ;;  %v2042_v13 = vld [vmem:[%s2250_s29] sm:$0xff]   ;;  %s2524_s29 = scalar_lea.vmem %s2486_s2, %s2233_s20  ;;  %s2525_s28 = scalar_lea.vmem %s2487_s3, %s2233_s20  ;;  %vm787_vm3 = vcmask 64512  }
  0x31   : > { %1888 = vmatprep.subr.bf16.mxu1 %v2111_v12  ;;  %1892 = vmatprep.mubr.msk.bf16.mxu1 %vm2112_vm2, %v2111_v12  ;;  %v1816_v18 = vld [vmem:[%s2524_s29] ss:$0 sm:$0xff]  ;;  %s2526_s16 = scalar_lea.vmem %s2489_s5, %s2233_s20  ;;  %s2113_s19 = smov 96   ;;  %vm851_vm4 = vcmask 1043456   ;;  %vm1570_vm5 = vcmask 523264  }
  0x32   : > { %1889 = vmatpush3.bf16.msra.mxu1 %v2041_v11  ;;  %1902 = vmatprep.subr.bf16.mxu0 %v2111_v12  ;;  %v1817_v20 = vld [vmem:[%s2525_s28] ss:$0 sm:$0xff]  ;;  %s2114_s1 = smov 120   ;;  %s2115_s17 = smov 88  }
  0x33   : > { %1890 = vmatprep.subr.bf16.mxu1 %v2111_v12  ;;  %1904 = vmatprep.mubr.msk.bf16.mxu0 %vm2112_vm2, %v2111_v12  ;;  %v1818_v24 = vld [vmem:[%s2526_s16] ss:$0 sm:$0xff]  ;;  %s2116_s15 = smov 56   ;;  %s2117_s14 = smov 64  }
  0x34   : > { %s2118_s23 = smov 80   ;;  %s2119_s21 = smov 112  }
  0x35   : > { %s2120_s0 = smov 48   ;;  %s2121_s6 = smov 104  }
  0x36   : > { %v2303_v4 = vld [vmem:[%s2295_s4] sm:$0xff]  ;;  %1891 = vmatpush3.bf16.msra.mxu1 %v2042_v13  ;;  %s2122_s29 = smov 72   ;;  %s2123_s22 = smov 40  }
  0x37   : > { %v682_v5 = vsel %vm681_vm1, %v2303_v4, 0.0  ;;  %1896 = vmatprep.subr.bf16.mxu1 %v2111_v12  ;;  %s2527_s28 = scalar_lea.vmem %s2491_s7, %s2233_s20  ;;  %s2528_s16 = sld [smem:[#allocation12_spill]] }
  0x38   : > { %683 = vadd.xlane.f32.xlu0 %v682_v5 }
  0xc1   : > { %v684_v6 = vpop.xlane.xlu0 %683 }
  0xc2   : > { %v686_v7 = vmul.f32 0.03125, %v684_v6 }
  0xc4   : > { %v687_v8 = vsub.f32 %v2303_v4, %v686_v7  ;;  %v777_v7 = vld [vmem:[%s2259_s24] sm:$0xf] }
  0xc6   : > { %v688_v9 = vmul.f32 %v687_v8, %v687_v8 }
  0xc8   : > { %v689_v10 = vsel %vm681_vm1, %v688_v9, 0.0  ;;  %v778_v9 = vld [vmem:[%s2259_s24 + $0x4] sm:$0xf] }
  0xc9   : > { %690 = vadd.xlane.f32.xlu0 %v689_v10  ;;  %v1012_v10 = vsel %vm851_vm4, %v778_v9, 0  ;;  %v780_v9 = vld [vmem:[%s2259_s24 + $0xc] sm:$0xf] }
 0x152   : > { %v691_v14 = vpop.xlane.xlu0 %690 }
 0x153   : > { %v692_v15 = vmul.f32 0.03125, %v691_v14 }
 0x155   : > { %v693_v16 = vadd.f32 1e-06, %v692_v15 }
 0x157   : > { %2049 = vrsqrt.f32 %v693_v16 }
 0x164   : > { %v2050_v17 = vpop.eup %2049 }
 0x165   : > { %v695_v19 = vmul.f32 %v2050_v17, %v687_v8  ;;  %v1058_v8 = vsel %vm851_vm4, %v777_v7, 0 }
 0x167   : > { %v702_v21 = vmul.f32 %v1816_v18, %v695_v19 }
 0x169   : > { %v709_v22 = vadd.f32 %v1817_v20, %v702_v21 }
 0x16b   : > { %v710_v23 = vpack.c.bf16 %v709_v22, %v709_v22 }
 0x16d   : > { %1893 = vmatmul.mubr.msk.bf16.vlgmr.msra.gmra.mxu1 %vm681_vm1, %v710_v23 }
 0x16e   : > { %1898 = vmatprep.mubr.msk.bf16.mxu1 %vm2112_vm2, %v2111_v12 }
 0x22d   : > { %v771_v25 = vpop.f32.mrf.mxu1 }
 0x22e   : > { %v772_v26 = vadd.f32 %v1818_v24, %v771_v25 }
 0x22f   : > { %v1894_v27 = vpop.f32.mrf.mxu1 }
 0x230   : > { %v781_v28 = vmul.f32 0.35355338, %v772_v26  ;;  %v2337_v29 = vpack.c.bf16 %v772_v26, %v772_v26 }
 0x231   : > { %v774_v30 = vpop.f32.mrf.mxu1 }
 0x232   : > { %v2339_v31 = vpack.c.bf16 %v781_v28, %v781_v28  ;;  %785 = vrot.lane.b32.xlu1 %v2337_v29, %s2113_s19  ;;  %s2529_s19 = scalar_lea.vmem %s2528_s16, %s2233_s20 }
 0x233   : > { %v1895_v32 = vpop.f32.mrf.mxu1 }
 0x234   : > { %897 = vrot.lane.b32.xlu0 %v2339_v31, %s2114_s1 }
 0x236   : > { %899 = vrot.lane.b32.xlu1 %v2337_v29, %s2115_s17 }
 0x2a4   : > { %v786_v33 = vpop.permute.xlu1 %785 }
 0x2a5   : > { %v792_v34 = vsel %vm787_vm3, %v786_v33, 0 }
 0x2a6   : > { %1897 = vmatpush3.bf16.xpose.msra.mxu1 %v792_v34  ;;  %v898_v37 = vpop.permute.xlu0 %897 }
 0x2a7   : > { %1908 = vmatprep.subr.bf16.mxu1 %v2111_v12 }
 0x2a8   : > { %v900_v35 = vpop.permute.xlu1 %899 }
 0x2a9   : > { %v905_v36 = vsel %vm787_vm3, %v900_v35, 0 }
 0x2ad   : > { %1899 = vmatmul.mubr.msk.bf16.vlgmr.msra.gmra.mxu1 %vm787_vm3, %v2339_v31 }
 0x2ae   : > { %1909 = vmatpush3.bf16.xpose.msra.mxu1 %v905_v36  ;;  %1910 = vmatprep.mubr.msk.bf16.mxu1 %vm2112_vm2, %v2111_v12 }
 0x2af   : > { %1920 = vmatprep.subr.bf16.mxu1 %v2111_v12 }
 0x2b5   : > { %1911 = vmatmul.mubr.msk.bf16.vlgmr.msra.gmra.mxu1 %vm787_vm3, %v898_v37 }
 0x2b6   : > { %1922 = vmatprep.mubr.msk.bf16.mxu1 %vm2112_vm2, %v2111_v12  ;;  %1921 = vmatpush3.bf16.msra.mxu1 %v1012_v10 }
 0x2b7   : > { %1932 = vmatprep.subr.bf16.mxu1 %v2111_v12 }
 0x36d   : > { %v828_v38 = vpop.f32.mrf.mxu1 }
 0x36e   : > { %v834_v39 = vsel %vm787_vm3, %v828_v38, -inf }
 0x36f   : > { %835 = vmax.xlane.f32.xlu1 %v834_v39  ;;  %v1900_v40 = vpop.f32.mrf.mxu1 }
 0x371   : > { %v831_v41 = vpop.f32.mrf.mxu1 }
 0x373   : > { %v1901_v42 = vpop.f32.mrf.mxu1 }
 0x375   : > { %v941_v43 = vpop.f32.mrf.mxu1 }
 0x376   : > { %v947_v44 = vsel %vm787_vm3, %v941_v43, -inf }
 0x377   : > { %948 = vmax.xlane.f32.xlu0 %v947_v44  ;;  %v1912_v45 = vpop.f32.mrf.mxu1 }
 0x379   : > { %v944_v46 = vpop.f32.mrf.mxu1 }
 0x37b   : > { %v1913_v47 = vpop.f32.mrf.mxu1 }
 0x38d   : > { %959 = vrot.lane.b32.xlu0 %v2337_v29, %s2116_s15 }
 0x3f8   : > { %v836_v48 = vpop.xlane.xlu1 %835 }
 0x3f9   : > { %v837_v49 = vsub.f32 %v828_v38, %v836_v48 }
 0x3fb   : > { %v838_v50 = vmul.f32 1.442695, %v837_v49 }
 0x3fd   : > { %2051 = vpow2.f32 %v838_v50 }
 0x400   : > { %v949_v51 = vpop.xlane.xlu0 %948 }
 0x401   : > { %v950_v52 = vsub.f32 %v941_v43, %v949_v51 }
 0x403   : > { %v951_v53 = vmul.f32 1.442695, %v950_v52 }
 0x404   : > { %v960_v0 = vpop.permute.xlu0 %959 }
 0x405   : > { %2053 = vpow2.f32 %v951_v53  ;;  %v965_v2 = vsel %vm851_vm4, %v960_v0, 0 }
 0x40a   : > { %v2052_v54 = vpop.eup %2051 }
 0x40b   : > { %v840_v55 = vsel %vm787_vm3, %v2052_v54, 0.0 }
 0x40c   : > { %841 = vadd.xlane.f32.xlu1 %v840_v55 }
 0x412   : > { %v2054_v56 = vpop.eup %2053 }
 0x413   : > { %v953_v57 = vsel %vm787_vm3, %v2054_v56, 0.0 }
 0x414   : > { %954 = vadd.xlane.f32.xlu1 %v953_v57 }
 0x425   : > { %846 = vrot.lane.b32.xlu1 %v2337_v29, %s2117_s14 }
 0x429   : > { %1102 = vrot.lane.b32.xlu1 %v2337_v29, %s2118_s23 }
 0x42d   : > { %1100 = vrot.lane.b32.xlu1 %v2339_v31, %s2119_s21 }
 0x495   : > { %v842_v58 = vpop.xlane.xlu1 %841 }
 0x496   : > { %2055 = vrcp.f32 %v842_v58 }
 0x49d   : > { %v955_v59 = vpop.xlane.xlu1 %954 }
 0x49e   : > { %2057 = vrcp.f32 %v955_v59 }
 0x4a1   : > { %v847_v60 = vpop.permute.xlu1 %846 }
 0x4a2   : > { %v853_v61 = vsel %vm851_vm4, %v847_v60, 0 }
 0x4a3   : > { %v2056_v62 = vpop.eup %2055  ;;  %1903 = vmatpush3.bf16.msra.mxu0 %v853_v61 }
 0x4a4   : > { %1914 = vmatprep.subr.bf16.mxu0 %v2111_v12  ;;  %v844_v63 = vmul.f32 %v2056_v62, %v2052_v54  ;;  %v779_v54 = vld [vmem:[%s2259_s24 + $0x8] sm:$0xf] }
 0x4a5   : > { %v1103_v17 = vpop.permute.xlu1 %1102  ;;  %v1215_v55 = vsel %vm851_vm4, %v779_v54, 0  ;;  %v2047_v54 = vld [vmem:[%s2290_s8 + $0x8] sm:$0xff]  }
 0x4a6   : > { %v845_v1 = vpack.c.bf16 %v844_v63, %v844_v63  ;;  %v1108_v21 = vsel %vm787_vm3, %v1103_v17, 0 }
 0x4a8   : > { %1905 = vmatmul.mubr.msk.bf16.vlgmr.msra.gmra.mxu0 %vm787_vm3, %v845_v1 }
 0x4a9   : > { %1915 = vmatpush3.bf16.msra.mxu0 %v965_v2  ;;  %1916 = vmatprep.mubr.msk.bf16.mxu0 %vm2112_vm2, %v2111_v12  ;;  %v1101_v24 = vpop.permute.xlu1 %1100 }
 0x4aa   : > { %1926 = vmatprep.subr.bf16.mxu0 %v2111_v12 }
 0x4ab   : > { %v2058_v3 = vpop.eup %2057 }
 0x4ac   : > { %v957_v5 = vmul.f32 %v2058_v3, %v2054_v56 }
 0x4ae   : > { %v958_v6 = vpack.c.bf16 %v957_v5, %v957_v5 }
 0x4b0   : > { %1917 = vmatmul.mubr.msk.bf16.vlgmr.msra.gmra.mxu0 %vm787_vm3, %v958_v6 }
 0x4b1   : > { %1928 = vmatprep.mubr.msk.bf16.mxu0 %vm2112_vm2, %v2111_v12  ;;  %1927 = vmatpush3.bf16.msra.mxu0 %v1058_v8 }
 0x4b2   : > { %1938 = vmatprep.subr.bf16.mxu0 %v2111_v12 }
 0x568   : > { %v889_v11 = vpop.f32.mrf.mxu0 }
 0x569   : > { %v895_v13 = vpack.c.bf16 %v889_v11, %v889_v11  ;;  %v1373_v11 = vsel %vm851_vm4, %v780_v9, 0 }
 0x56a   : > { %v1906_v14 = vpop.f32.mrf.mxu0 }
 0x56b   : > { %1929 = vmatmul.mubr.msk.bf16.vlgmr.msra.gmra.mxu0 %vm787_vm3, %v895_v13 }
 0x56c   : > { %v892_v15 = vpop.f32.mrf.mxu0  ;;  %1940 = vmatprep.mubr.msk.bf16.mxu0 %vm2112_vm2, %v2111_v12 }
 0x56e   : > { %v1907_v16 = vpop.f32.mrf.mxu0 }
 0x570   : > { %v1001_v18 = vpop.f32.mrf.mxu0 }
 0x571   : > { %v1007_v19 = vpack.c.bf16 %v1001_v18, %v1001_v18 }
 0x572   : > { %v1918_v20 = vpop.f32.mrf.mxu0 }
 0x573   : > { %1923 = vmatmul.mubr.msk.bf16.vlgmr.msra.gmra.mxu1 %vm787_vm3, %v1007_v19 }
 0x574   : > { %1933 = vmatpush3.bf16.xpose.msra.mxu1 %v1108_v21  ;;  %v1004_v22 = vpop.f32.mrf.mxu0  ;;  %1934 = vmatprep.mubr.msk.bf16.mxu1 %vm2112_vm2, %v2111_v12 }
 0x575   : > { %1944 = vmatprep.subr.bf16.mxu1 %v2111_v12 }
 0x576   : > { %v1919_v23 = vpop.f32.mrf.mxu0 }
 0x57b   : > { %1935 = vmatmul.mubr.msk.bf16.vlgmr.msra.gmra.mxu1 %vm787_vm3, %v1101_v24 }
 0x57c   : > { %1946 = vmatprep.mubr.msk.bf16.mxu1 %vm2112_vm2, %v2111_v12  ;;  %1945 = vmatpush3.bf16.msra.mxu1 %v1215_v55  ;;  %v2048_v55 = vld [vmem:[%s2290_s8] sm:$0xff]  }
 0x57d   : > { %1956 = vmatprep.subr.bf16.mxu1 %v2111_v12 }
 0x62b   : > { %v1094_v25 = vpop.f32.mrf.mxu0 }
 0x62d   : > { %v1930_v26 = vpop.f32.mrf.mxu0 }
 0x62f   : > { %v1097_v27 = vpop.f32.mrf.mxu0 }
 0x631   : > { %v1931_v28 = vpop.f32.mrf.mxu0 }
 0x632   : > { %v1834_v28 = vld [vmem:[%s2527_s28] ss:$0 sm:$0xff] }
 0x633   : > { %v1048_v30 = vpop.f32.mrf.mxu1 }
 0x634   : > { %v2390_v32 = vadd.f32 %v1094_v25, %v1048_v30 }
 0x635   : > { %v1924_v33 = vpop.f32.mrf.mxu1 }
 0x637   : > { %v1051_v34 = vpop.f32.mrf.mxu1 }
 0x639   : > { %v1925_v35 = vpop.f32.mrf.mxu1 }
 0x63b   : > { %v1144_v36 = vpop.f32.mrf.mxu1 }
 0x63c   : > { %v1150_v37 = vsel %vm787_vm3, %v1144_v36, -inf }
 0x63d   : > { %1151 = vmax.xlane.f32.xlu1 %v1150_v37  ;;  %v1936_v38 = vpop.f32.mrf.mxu1 }
 0x63f   : > { %v1147_v39 = vpop.f32.mrf.mxu1 }
 0x641   : > { %v1937_v40 = vpop.f32.mrf.mxu1 }
 0x64e   : > { %1162 = vrot.lane.b32.xlu1 %v2337_v29, %s2120_s0 }
 0x652   : > { %1258 = vrot.lane.b32.xlu1 %v2339_v31, %s2121_s6 }
 0x6c6   : > { %v1152_v41 = vpop.xlane.xlu1 %1151 }
 0x6c7   : > { %v1153_v42 = vsub.f32 %v1144_v36, %v1152_v41 }
 0x6c9   : > { %v1154_v43 = vmul.f32 1.442695, %v1153_v42  ;;  %v2043_v42 = vld [vmem:[%s2276_s30 + $0x8] sm:$0xff]  }
 0x6ca   : > { %v1163_v44 = vpop.permute.xlu1 %1162 }
 0x6cb   : > { %2059 = vpow2.f32 %v1154_v43  ;;  %v1168_v45 = vsel %vm851_vm4, %v1163_v44, 0  ;;  %v2044_v43 = vld [vmem:[%s2276_s30] sm:$0xff]   ;;  %s2530_s30 = scalar_lea.vmem %s2493_s9, %s2233_s20 }
 0x6cc   : > { %1939 = vmatpush3.bf16.msra.mxu0 %v1168_v45 }
 0x6cd   : > { %1950 = vmatprep.subr.bf16.mxu0 %v2111_v12 }
 0x6ce   : > { %v1259_v53 = vpop.permute.xlu1 %1258 }
 0x6d8   : > { %v2060_v46 = vpop.eup %2059 }
 0x6d9   : > { %v1156_v47 = vsel %vm787_vm3, %v2060_v46, 0.0 }
 0x6da   : > { %1157 = vadd.xlane.f32.xlu0 %v1156_v47  ;;  %v1835_v47 = vld [vmem:[%s2529_s19] ss:$0 sm:$0xff] }
 0x6f0   : > { %1260 = vrot.lane.b32.xlu0 %v2337_v29, %s2122_s29 }
 0x763   : > { %v1158_v48 = vpop.xlane.xlu0 %1157 }
 0x764   : > { %2061 = vrcp.f32 %v1158_v48 }
 0x767   : > { %v1261_v50 = vpop.permute.xlu0 %1260 }
 0x768   : > { %v1266_v52 = vsel %vm787_vm3, %v1261_v50, 0 }
 0x771   : > { %v2062_v31 = vpop.eup %2061 }
 0x772   : > { %v1160_v49 = vmul.f32 %v2062_v31, %v2060_v46  ;;  %v1836_v31 = vld [vmem:[%s2530_s30] ss:$0 sm:$0xff] }
 0x774   : > { %v1161_v51 = vpack.c.bf16 %v1160_v49, %v1160_v49 }
 0x776   : > { %1941 = vmatmul.mubr.msk.bf16.vlgmr.msra.gmra.mxu0 %vm787_vm3, %v1161_v51 }
 0x777   : > { %1951 = vmatpush3.bf16.xpose.msra.mxu0 %v1266_v52  ;;  %1952 = vmatprep.mubr.msk.bf16.mxu0 %vm2112_vm2, %v2111_v12  ;;  %v2045_v52 = vld [vmem:[%s2290_s8 + $0x18] sm:$0xff]  }
 0x778   : > { %1962 = vmatprep.subr.bf16.mxu0 %v2111_v12 }
 0x77e   : > { %1953 = vmatmul.mubr.msk.bf16.vlgmr.msra.gmra.mxu0 %vm787_vm3, %v1259_v53  ;;  %v2046_v53 = vld [vmem:[%s2290_s8 + $0x10] sm:$0xff]  }
 0x77f   : > { %1964 = vmatprep.mubr.msk.bf16.mxu0 %vm2112_vm2, %v2111_v12  ;;  %1963 = vmatpush3.bf16.msra.mxu0 %v1373_v11 }
 0x780   : > { %1976 = vmatprep.subr.bf16.mxu0 %v2111_v12 }
 0x836   : > { %v1204_v56 = vpop.f32.mrf.mxu0 }
 0x837   : > { %v1210_v57 = vpack.c.bf16 %v1204_v56, %v1204_v56  ;;  %v1837_v56 = vld [vmem:[%s654_s12] ss:$0 sm:$0xff] }
 0x838   : > { %v1942_v58 = vpop.f32.mrf.mxu0 }
 0x839   : > { %1947 = vmatmul.mubr.msk.bf16.vlgmr.msra.gmra.mxu1 %vm787_vm3, %v1210_v57 }
 0x83a   : > { %v1207_v59 = vpop.f32.mrf.mxu0  ;;  %1958 = vmatprep.mubr.msk.bf16.mxu1 %vm2112_vm2, %v2111_v12 }
 0x83c   : > { %v1943_v60 = vpop.f32.mrf.mxu0 }
 0x83e   : > { %v1302_v61 = vpop.f32.mrf.mxu0 }
 0x83f   : > { %v1308_v62 = vsel %vm787_vm3, %v1302_v61, -inf }
 0x840   : > { %1309 = vmax.xlane.f32.xlu1 %v1308_v62  ;;  %v1954_v63 = vpop.f32.mrf.mxu0 }
 0x842   : > { %v1305_v0 = vpop.f32.mrf.mxu0 }
 0x844   : > { %v1955_v1 = vpop.f32.mrf.mxu0 }
 0x8c9   : > { %v1310_v2 = vpop.xlane.xlu1 %1309 }
 0x8ca   : > { %v1311_v3 = vsub.f32 %v1302_v61, %v1310_v2 }
 0x8cc   : > { %v1312_v5 = vmul.f32 1.442695, %v1311_v3 }
 0x8ce   : > { %2063 = vpow2.f32 %v1312_v5 }
 0x8db   : > { %v2064_v6 = vpop.eup %2063 }
 0x8dc   : > { %v1314_v7 = vsel %vm787_vm3, %v2064_v6, 0.0 }
 0x8dd   : > { %1315 = vadd.xlane.f32.xlu0 %v1314_v7 }
 0x8f3   : > { %1320 = vrot.lane.b32.xlu0 %v2337_v29, %s2123_s22 }
 0x8f9   : > { %v1251_v8 = vpop.f32.mrf.mxu1 }
 0x8fa   : > { %v1257_v10 = vadd.f32 %v1251_v8, %v2390_v32  ;;  %v1841_v8 = vld [vmem:[%s662_s18] ss:$0 sm:$0xff] }
 0x8fb   : > { %v1948_v13 = vpop.f32.mrf.mxu1 }
 0x8fd   : > { %v1254_v14 = vpop.f32.mrf.mxu1 }
 0x8ff   : > { %v1949_v15 = vpop.f32.mrf.mxu1 }
 0x966   : > { %v1316_v16 = vpop.xlane.xlu0 %1315 }
 0x967   : > { %2065 = vrcp.f32 %v1316_v16 }
 0x96a   : > { %v1321_v17 = vpop.permute.xlu0 %1320 }
 0x96b   : > { %v1326_v18 = vsel %vm851_vm4, %v1321_v17, 0 }
 0x96c   : > { %1957 = vmatpush3.bf16.msra.mxu1 %v1326_v18 }
 0x96d   : > { %1968 = vmatprep.subr.bf16.mxu1 %v2111_v12 }
 0x974   : > { %v2066_v29 = vpop.eup %2065 }
 0x975   : > { %v1318_v19 = vmul.f32 %v2066_v29, %v2064_v6 }
 0x977   : > { %v1319_v20 = vpack.c.bf16 %v1318_v19, %v1318_v19 }
 0x979   : > { %1959 = vmatmul.mubr.msk.bf16.vlgmr.msra.gmra.mxu1 %vm787_vm3, %v1319_v20 }
 0x97a   : > { %1972 = vmatprep.mubr.msk.bf16.mxu1 %vm2112_vm2, %v2111_v12  ;;  %1969 = vmatpush3.bf16.msra.mxu1 %v2043_v42 }
 0x97b   : > { %1970 = vmatprep.subr.bf16.mxu1 %v2111_v12 }
 0x97e   : > { %1971 = vmatpush3.bf16.msra.mxu1 %v2044_v43 }
 0xa39   : > { %v1362_v21 = vpop.f32.mrf.mxu1 }
 0xa3a   : > { %v1368_v22 = vpack.c.bf16 %v1362_v21, %v1362_v21 }
 0xa3b   : > { %v1960_v23 = vpop.f32.mrf.mxu1 }
 0xa3c   : > { %1965 = vmatmul.mubr.msk.bf16.vlgmr.msra.gmra.mxu0 %vm787_vm3, %v1368_v22 }
 0xa3d   : > { %v1365_v24 = vpop.f32.mrf.mxu1  ;;  %1984 = vmatprep.mubr.msk.bf16.mxu0 %vm2112_vm2, %v2111_v12  ;;  %1977 = vmatpush3.bf16.msra.mxu0 %v2045_v52 }
 0xa3e   : > { %1978 = vmatprep.subr.bf16.mxu0 %v2111_v12 }
 0xa3f   : > { %v1961_v25 = vpop.f32.mrf.mxu1 }
 0xa41   : > { %1979 = vmatpush3.bf16.msra.mxu0 %v2046_v53 }
 0xa42   : > { %1980 = vmatprep.subr.bf16.mxu0 %v2111_v12 }
 0xa45   : > { %1981 = vmatpush3.bf16.msra.mxu0 %v2047_v54 }
 0xa46   : > { %1982 = vmatprep.subr.bf16.mxu0 %v2111_v12 }
 0xa49   : > { %1983 = vmatpush3.bf16.msra.mxu0 %v2048_v55 }
 0xafc   : > { %v1409_v26 = vpop.f32.mrf.mxu0 }
 0xafd   : > { %v1415_v27 = vadd.f32 %v1409_v26, %v1257_v10 }
 0xafe   : > { %v1966_v30 = vpop.f32.mrf.mxu0 }
 0xaff   : > { %v1416_v32 = vadd.f32 %v1415_v27, %v2303_v4 }
 0xb00   : > { %v1412_v33 = vpop.f32.mrf.mxu0 }
 0xb01   : > { %v1424_v34 = vadd.f32 %v1834_v28, %v1416_v32 }
 0xb02   : > { %v1967_v35 = vpop.f32.mrf.mxu0 }
 0xb03   : > { %v1427_v36 = vsel %vm681_vm1, %v1424_v34, 0.0 }
 0xb04   : > { %1428 = vadd.xlane.f32.xlu1 %v1427_v36 }
 0xb8d   : > { %v1429_v37 = vpop.xlane.xlu1 %1428 }
 0xb8e   : > { %v1430_v38 = vmul.f32 0.03125, %v1429_v37 }
 0xb90   : > { %v1431_v39 = vsub.f32 %v1424_v34, %v1430_v38 }
 0xb92   : > { %v1432_v40 = vmul.f32 %v1431_v39, %v1431_v39 }
 0xb94   : > { %v1433_v41 = vsel %vm681_vm1, %v1432_v40, 0.0 }
 0xb95   : > { %1434 = vadd.xlane.f32.xlu1 %v1433_v41 }
 0xc1e   : > { %v1435_v4 = vpop.xlane.xlu1 %1434 }
 0xc1f   : > { %v1436_v44 = vmul.f32 0.03125, %v1435_v4 }
 0xc21   : > { %v1437_v45 = vadd.f32 1e-06, %v1436_v44 }
 0xc23   : > { %2067 = vrsqrt.f32 %v1437_v45 }
 0xc30   : > { %v2068_v46 = vpop.eup %2067 }
 0xc31   : > { %v1439_v48 = vmul.f32 %v2068_v46, %v1431_v39 }
 0xc33   : > { %v1446_v49 = vmul.f32 %v1835_v47, %v1439_v48 }
 0xc35   : > { %v1453_v50 = vadd.f32 %v1836_v31, %v1446_v49 }
 0xc37   : > { %v1454_v51 = vpack.c.bf16 %v1453_v50, %v1453_v50 }
 0xc39   : > { %1973 = vmatmul.mubr.msk.bf16.vlgmr.msra.gmra.mxu1 %vm681_vm1, %v1454_v51 }
 0xcf9   : > { %v1515_v57 = vpop.f32.mrf.mxu1 }
 0xcfa   : > { %v1516_v58 = vadd.f32 %v1837_v56, %v1515_v57 }
 0xcfb   : > { %v1974_v59 = vpop.f32.mrf.mxu1 }
 0xcfc   : > { %v1521_v60 = vmul.f32 %v1516_v58, %v1516_v58 }
 0xcfd   : > { %v1518_v61 = vpop.f32.mrf.mxu1 }
 0xcfe   : > { %v1522_v62 = vmul.f32 %v1521_v60, %v1516_v58 }
 0xcff   : > { %v1975_v63 = vpop.f32.mrf.mxu1 }
 0xd00   : > { %v1523_v0 = vmul.f32 0.044715, %v1522_v62 }
 0xd02   : > { %v1524_v1 = vadd.f32 %v1523_v0, %v1516_v58 }
 0xd04   : > { %v1525_v2 = vmul.f32 0.7978846, %v1524_v1 }
 0xd06   : > { %2069 = vtanh.f32 %v1525_v2 }
 0xd13   : > { %v2070_v12 = vpop.eup %2069 }
 0xd14   : > { %v1527_v3 = vadd.f32 1.0, %v2070_v12 }
 0xd16   : > { %v1528_v5 = vmul.f32 0.5, %v1527_v3 }
 0xd18   : > { %v1529_v6 = vmul.f32 %v1528_v5, %v1516_v58 }
 0xd1a   : > { %v1530_v7 = vpack.c.bf16 %v1529_v6, %v1529_v6 }
 0xd1c   : > { %1985 = vmatmul.mubr.msk.bf16.vlgmr.msra.gmra.mxu0 %vm1570_vm5, %v1530_v7 }
 0xddc   : > { %v1608_v9 = vpop.f32.mrf.mxu0 }
 0xddd   : > { %v1609_v10 = vadd.f32 %v1841_v8, %v1608_v9 }
 0xdde   : > { %v1986_v11 = vpop.f32.mrf.mxu0 }
 0xddf   : > { %v1614_v13 = vadd.f32 %v1609_v10, %v1424_v34 }
 0xde0   : > { %v1611_v14 = vpop.f32.mrf.mxu0 }
 0xde1   : > { %1615 = vst.msk [vmem:[%s2295_s4] sm:$0xff] %vm681_vm1, %v1614_v13 }
 0xde2   : > { %v1987_v15 = vpop.f32.mrf.mxu0 }
 0xde3 PF: > { %s2531_s23 = sld [smem:[#allocation5_spill]] }
 0xde4   : > { %s2532_s29 = sld [smem:[#allocation3_spill]] }
 0xde5   : > { %s2533_s30 = sld [smem:[#allocation4_spill]] }
 0xde6   : > { %s2534_s15 = sld [smem:[#allocation6_spill]] }
 0xde7   : > { %s2535_s16 = sld [smem:[#allocation7_spill]] }
 0xde9   : > { %s24_s17 = sadd.s32 1, %s2531_s23  }
 0xdea   : > { %p21_p8 = scmp.ge.s32.totalorder %s24_s17, 6  }
 0xdec   :  { %23 = sbr.rel (!%p21_p8) target bundleno = 8 (0x8), region = 146 }

</bundles_post_ra>
